<compile_context>
chip_gen: v7x
topology: tpu7x:2x2x1
jax: 0.10.0
libtpu: 0.0.40
codegen_flags: <defaults>
</compile_context>

<pallas_src>
import jax
import jax.numpy as jnp
from jax.experimental import pallas as pl
from jax.experimental.pallas import tpu as pltpu


def _round_up(x, m):
    return ((x + m - 1) // m) * m


def dense_model_kernel(x_ref, w1_ref, b1_ref, w2_ref, b2_ref, o_ref):
    # x_ref: (TM, Dp) bf16, w1_ref: (Dp, 64) bf16 -> f32 accumulate on the MXU
    h = jnp.dot(x_ref[...], w1_ref[...], preferred_element_type=jnp.float32)
    h = jnp.maximum(h + b1_ref[...], 0.0)            # bias + ReLU (f32)
    # Dropout(p=0.3): identity at inference time (PyTorch eval semantics).
    out = jnp.dot(h, w2_ref[...], preferred_element_type=jnp.float32)
    o_ref[...] = (out + b2_ref[...]).astype(o_ref.dtype)


def dense_model_forward(x, w1, b1, w2, b2, *, max_batch_tile=512):
    """x: any shape [B, ...]; flattened to [B, D] (matches torch .view(batch, -1)).

    w1: [D, H] f32, b1: [1, H] f32, w2: [H, O] f32, b2: [1, O] f32.
    """
    batch = x.shape[0]
    x2d = x.reshape(batch, -1)
    d = x2d.shape[1]
    h = w1.shape[1]
    o = w2.shape[1]

    # Lane-align the contraction dim (6240 -> 6272 = 49*128) and sublane-align
    # / tile the batch dim. Zero padding keeps results identical.
    d_pad = _round_up(d, 128)
    tm = min(max_batch_tile, _round_up(batch, 8))
    b_pad = _round_up(batch, tm)

    # bf16 for the two bandwidth-dominant operands; biases / w2 stay f32.
    x_p = jnp.pad(x2d.astype(jnp.bfloat16),
                  ((0, b_pad - batch), (0, d_pad - d)))
    w1_p = jnp.pad(w1.astype(jnp.bfloat16), ((0, d_pad - d), (0, 0)))
    b1_f = b1.astype(jnp.float32)
    w2_f = w2.astype(jnp.float32)
    b2_f = b2.astype(jnp.float32)

    out = pl.pallas_call(
        dense_model_kernel,
        out_shape=jax.ShapeDtypeStruct((b_pad, o), jnp.float32),
        grid=(b_pad // tm,),
        in_specs=[
            pl.BlockSpec((tm, d_pad), lambda i: (i, 0)),   # x tile (pipelined)
            pl.BlockSpec((d_pad, h), lambda i: (0, 0)),    # w1: VMEM-resident
            pl.BlockSpec((1, h), lambda i: (0, 0)),        # b1: resident
            pl.BlockSpec((h, o), lambda i: (0, 0)),        # w2: resident (tiny)
            pl.BlockSpec((1, o), lambda i: (0, 0)),        # b2: resident (tiny)
        ],
        out_specs=pl.BlockSpec((tm, o), lambda i: (i, 0)),
        compiler_params=pltpu.CompilerParams(
            dimension_semantics=("parallel",),             # shards across TCs on v7x
            vmem_limit_bytes=32 * 1024 * 1024,             # safe on v5e/v6e/v7x
        ),
    )(x_p, w1_p, b1_f, w2_f, b2_f)

    return out[:batch]


def init_params(input_unit=6240, hidden=64, out=3, seed=0):
    """Deterministic synthetic parameters (shapes from DenseModel.__init__)."""
    k1, k2, k3, k4 = jax.random.split(jax.random.PRNGKey(seed), 4)
    # stored as [in, out] (transposed vs. PyTorch nn.Linear weight [out, in])
    w1 = jax.random.normal(k1, (input_unit, hidden), jnp.float32) * (1.0 / input_unit ** 0.5)
    b1 = jax.random.normal(k2, (1, hidden), jnp.float32) * 0.01
    w2 = jax.random.normal(k3, (hidden, out), jnp.float32) * (1.0 / hidden ** 0.5)
    b2 = jax.random.normal(k4, (1, out), jnp.float32) * 0.01
    return w1, b1, w2, b2


if __name__ == "__main__":
    INPUT_UNIT = 6240  # module default; 16 * 390 = 6240
    BATCH = 2

    key = jax.random.PRNGKey(0)
    # non-flat input to exercise the .view(batch, -1) flattening
    x = jax.random.normal(key, (BATCH, 16, 390), jnp.float32)

    w1, b1, w2, b2 = init_params(INPUT_UNIT)

    y = dense_model_forward(x, w1, b1, w2, b2)
    y = jax.block_until_ready(y)

    # Reference of the same math (bf16 inputs, f32 accumulation) in pure JAX.
    x2d_bf = x.reshape(BATCH, -1).astype(jnp.bfloat16)
    w1_bf = w1.astype(jnp.bfloat16)
    h_ref = jnp.maximum(
        jnp.dot(x2d_bf, w1_bf, preferred_element_type=jnp.float32) + b1, 0.0)
    ref = jnp.dot(h_ref, w2, preferred_element_type=jnp.float32) + b2

    assert y.shape == (BATCH, 3)
    assert jnp.allclose(y, ref, atol=2e-3, rtol=2e-3), "mismatch vs reference"

    # Loose sanity check against the full-f32 math (bf16 cast error only).
    ref_f32 = jnp.maximum(x.reshape(BATCH, -1) @ w1 + b1, 0.0) @ w2 + b2
    assert jnp.allclose(y, ref_f32, atol=5e-2, rtol=5e-2), "bf16 drift too large"

    print("KERNEL_OK")
</pallas_src>

<mosaic_0001>
module attributes {stable_mosaic.version = 11 : i64} {
  func.func @dense_model_kernel(%arg0: i32, %arg1: memref<8x6272xbf16, #tpu.memory_space<vmem>>, %arg2: memref<6272x64xbf16, #tpu.memory_space<vmem>>, %arg3: memref<1x64xf32, #tpu.memory_space<vmem>>, %arg4: memref<64x3xf32, #tpu.memory_space<vmem>>, %arg5: memref<1x3xf32, #tpu.memory_space<vmem>>, %arg6: memref<8x3xf32, #tpu.memory_space<vmem>>) attributes {dimension_semantics = [#tpu.dimension_semantics<parallel>], iteration_bounds = array<i64: 1>, scalar_prefetch = 0 : i64, scratch_operands = 0 : i64, tpu.core_type = #tpu.core_type<tc>, window_params = [{transform_indices = @transform_0, window_bounds = array<i64: 8, 6272>}, {pipeline_mode = #tpu.pipeline_mode<synchronous>, transform_indices = @transform_1, window_bounds = array<i64: 6272, 64>}, {pipeline_mode = #tpu.pipeline_mode<synchronous>, transform_indices = @transform_2, window_bounds = array<i64: 1, 64>}, {pipeline_mode = #tpu.pipeline_mode<synchronous>, transform_indices = @transform_3, window_bounds = array<i64: 64, 3>}, {pipeline_mode = #tpu.pipeline_mode<synchronous>, transform_indices = @transform_4, window_bounds = array<i64: 1, 3>}, {transform_indices = @transform_5, window_bounds = array<i64: 8, 3>}]} {
    %c0 = arith.constant 0 : index
    %c0_0 = arith.constant 0 : index
    %0 = vector.load %arg1[%c0, %c0_0] : memref<8x6272xbf16, #tpu.memory_space<vmem>>, vector<8x6272xbf16>
    %c0_1 = arith.constant 0 : index
    %c0_2 = arith.constant 0 : index
    %1 = vector.load %arg2[%c0_1, %c0_2] : memref<6272x64xbf16, #tpu.memory_space<vmem>>, vector<6272x64xbf16>
    %cst = arith.constant dense<0.000000e+00> : vector<8x64xf32>
    %2 = tpu.matmul %0, %1, %cst {dimension_numbers = #tpu.dot_dimension_numbers<[1], [0], [0], [1], [0, 0, 1, 1], [], []>} : vector<8x6272xbf16>, vector<6272x64xbf16>, vector<8x64xf32> -> vector<8x64xf32>
    %c0_3 = arith.constant 0 : index
    %c0_4 = arith.constant 0 : index
    %3 = vector.load %arg3[%c0_3, %c0_4] : memref<1x64xf32, #tpu.memory_space<vmem>>, vector<1x64xf32>
    %4 = vector.broadcast %3 : vector<1x64xf32> to vector<8x64xf32>
    %5 = arith.addf %2, %4 : vector<8x64xf32>
    %cst_5 = arith.constant 0.000000e+00 : f32
    %6 = vector.broadcast %cst_5 : f32 to vector<8x64xf32>
    %7 = arith.maximumf %5, %6 : vector<8x64xf32>
    %c0_6 = arith.constant 0 : index
    %c0_7 = arith.constant 0 : index
    %8 = vector.load %arg4[%c0_6, %c0_7] : memref<64x3xf32, #tpu.memory_space<vmem>>, vector<64x3xf32>
    %cst_8 = arith.constant dense<0.000000e+00> : vector<8x3xf32>
    %9 = tpu.matmul %7, %8, %cst_8 {dimension_numbers = #tpu.dot_dimension_numbers<[1], [0], [0], [1], [0, 0, 1, 1], [], []>} : vector<8x64xf32>, vector<64x3xf32>, vector<8x3xf32> -> vector<8x3xf32>
    %c0_9 = arith.constant 0 : index
    %c0_10 = arith.constant 0 : index
    %10 = vector.load %arg5[%c0_9, %c0_10] : memref<1x3xf32, #tpu.memory_space<vmem>>, vector<1x3xf32>
    %11 = vector.broadcast %10 : vector<1x3xf32> to vector<8x3xf32>
    %12 = arith.addf %9, %11 : vector<8x3xf32>
    %c0_11 = arith.constant 0 : index
    %c0_12 = arith.constant 0 : index
    %13 = vector.load %arg6[%c0_11, %c0_12] : memref<8x3xf32, #tpu.memory_space<vmem>>, vector<8x3xf32>
    tpu.vector_store %arg6[%c0_11, %c0_12], %12 {strides = array<i32>} : memref<8x3xf32, #tpu.memory_space<vmem>>, vector<8x3xf32>,
    return
  }
  func.func @transform_0(%arg0: i32) -> (i32, i32) {
    %c0_i32 = arith.constant 0 : i32
    %c0_i32_0 = arith.constant 0 : i32
    return %arg0, %c0_i32 : i32, i32
  }
  func.func @transform_1(%arg0: i32) -> (i32, i32) {
    %c0_i32 = arith.constant 0 : i32
    %c0_i32_0 = arith.constant 0 : i32
    %c0_i32_1 = arith.constant 0 : i32
    return %c0_i32, %c0_i32_0 : i32, i32
  }
  func.func @transform_2(%arg0: i32) -> (i32, i32) {
    %c0_i32 = arith.constant 0 : i32
    %c0_i32_0 = arith.constant 0 : i32
    %c0_i32_1 = arith.constant 0 : i32
    return %c0_i32, %c0_i32_0 : i32, i32
  }
  func.func @transform_3(%arg0: i32) -> (i32, i32) {
    %c0_i32 = arith.constant 0 : i32
    %c0_i32_0 = arith.constant 0 : i32
    %c0_i32_1 = arith.constant 0 : i32
    return %c0_i32, %c0_i32_0 : i32, i32
  }
  func.func @transform_4(%arg0: i32) -> (i32, i32) {
    %c0_i32 = arith.constant 0 : i32
    %c0_i32_0 = arith.constant 0 : i32
    %c0_i32_1 = arith.constant 0 : i32
    return %c0_i32, %c0_i32_0 : i32, i32
  }
  func.func @transform_5(%arg0: i32) -> (i32, i32) {
    %c0_i32 = arith.constant 0 : i32
    %c0_i32_0 = arith.constant 0 : i32
    return %arg0, %c0_i32 : i32, i32
  }
}

</mosaic_0001>

<bundles_post_ra>
// kernel: tpu_custom_call.1
= control target key start
LH: loop header
LB: loop body
LE: loop exit
PB: predicated region body
PF: predicated region fallthrough
CT: control target
= control target key end

     0   :  { %vm5943_vm0 = vmmov 0   ;;  %vm4377_vm1 = vcmask 523264   ;;  %vm4451_vm2 = vcmask 23552   ;;  %s7271_s1 = inlined_call_operand.vmem [shape: bf16[6272,64], index: 1, kind: input, shape index: {}]   ;;  %s7272_s0 = inlined_call_operand.vmem [shape: bf16[8,6272], index: 0, kind: input, shape index: {}]   ;;  %s7273_s2 = inlined_call_operand.vmem [shape: f32[1,64], index: 2, kind: input, shape index: {}]   ;;  %s7274_s3 = inlined_call_operand.vmem [shape: f32[64,3], index: 3, kind: input, shape index: {}]   ;;  %s7275_s4 = inlined_call_operand.vmem [shape: f32[1,3], index: 4, kind: input, shape index: {}]   ;;  %s7276_s5 = inlined_call_operand.vmem [shape: f32[8,3], index: 5, kind: output, shape index: {}]  }
   0x1   :  { %v5501_v0 = vld [vmem:[%s7271_s1 + $0x40] sm:$0xff]   ;;  %v5505_v4 = vld [vmem:[%s7271_s1 + $0x48] sm:$0xff]   ;;  %v5509_v8 = vld [vmem:[%s7271_s1 + $0x50] sm:$0xff]  }
   0x2   :  { %v5502_v1 = vld [vmem:[%s7271_s1] sm:$0xff]   ;;  %4901 = vmatprep.subr.bf16.mxu0 %v5501_v0  ;;  %v5506_v5 = vld [vmem:[%s7271_s1 + $0x8] sm:$0xff]   ;;  %v5510_v9 = vld [vmem:[%s7271_s1 + $0x10] sm:$0xff]  }
   0x3   :  { %v5503_v2 = vld [vmem:[%s7271_s1 + $0xc0] sm:$0xff]   ;;  %4902 = vmatpush3.bf16.msra.mxu0 %v5502_v1  ;;  %v5507_v6 = vld [vmem:[%s7271_s1 + $0xc8] sm:$0xff]   ;;  %v5511_v10 = vld [vmem:[%s7271_s1 + $0xd0] sm:$0xff]  }
   0x4   :  { %v5504_v3 = vld [vmem:[%s7271_s1 + $0x80] sm:$0xff]   ;;  %4923 = vmatprep.subr.bf16.mxu1 %v5503_v2  ;;  %4903 = vmatprep.subr.bf16.mxu0 %v5505_v4  ;;  %v5508_v7 = vld [vmem:[%s7271_s1 + $0x88] sm:$0xff]   ;;  %v5512_v11 = vld [vmem:[%s7271_s1 + $0x90] sm:$0xff]  }
   0x5   :  { %4924 = vmatpush3.bf16.msra.mxu1 %v5504_v3  ;;  %v5513_v12 = vld [vmem:[%s7271_s1 + $0x58] sm:$0xff]   ;;  %v5517_v16 = vld [vmem:[%s7271_s1 + $0x60] sm:$0xff]   ;;  %v5521_v20 = vld [vmem:[%s7271_s1 + $0x68] sm:$0xff]  }
   0x6   :  { %4925 = vmatprep.subr.bf16.mxu1 %v5507_v6  ;;  %v5514_v13 = vld [vmem:[%s7271_s1 + $0x18] sm:$0xff]   ;;  %v5518_v17 = vld [vmem:[%s7271_s1 + $0x20] sm:$0xff]   ;;  %v5522_v21 = vld [vmem:[%s7271_s1 + $0x28] sm:$0xff]  }
   0x7   :  { %4904 = vmatpush3.bf16.msra.mxu0 %v5506_v5  ;;  %v5515_v14 = vld [vmem:[%s7271_s1 + $0xd8] sm:$0xff]   ;;  %v5519_v18 = vld [vmem:[%s7271_s1 + $0xe0] sm:$0xff]   ;;  %v5523_v22 = vld [vmem:[%s7271_s1 + $0xe8] sm:$0xff]  }
   0x8   :  { %4905 = vmatprep.subr.bf16.mxu0 %v5509_v8  ;;  %v5516_v15 = vld [vmem:[%s7271_s1 + $0x98] sm:$0xff]   ;;  %v5520_v19 = vld [vmem:[%s7271_s1 + $0xa0] sm:$0xff]   ;;  %v5524_v23 = vld [vmem:[%s7271_s1 + $0xa8] sm:$0xff]  }
   0x9   :  { %4926 = vmatpush3.bf16.msra.mxu1 %v5508_v7  ;;  %v5525_v24 = vld [vmem:[%s7271_s1 + $0x70] sm:$0xff]   ;;  %v5529_v28 = vld [vmem:[%s7271_s1 + $0x78] sm:$0xff]   ;;  %v21_v31 = vld [vmem:[%s7272_s0] sm:$0xff] }
   0xa   :  { %4927 = vmatprep.subr.bf16.mxu1 %v5511_v10  ;;  %v5526_v25 = vld [vmem:[%s7271_s1 + $0x30] sm:$0xff]   ;;  %v5530_v29 = vld [vmem:[%s7271_s1 + $0x38] sm:$0xff]   ;;  %v4458_v32 = vcombine.low %v21_v31, %v21_v31  ;;  %v4459_v33 = vcombine.high %v21_v31, %v21_v31  ;;  %v5535_v35 = vld [vmem:[%s7271_s1 + $0x140] sm:$0xff]  }
   0xb   :  { %4906 = vmatpush3.bf16.msra.mxu0 %v5510_v9  ;;  %v5527_v26 = vld [vmem:[%s7271_s1 + $0xf0] sm:$0xff]   ;;  %v5531_v30 = vld [vmem:[%s7271_s1 + $0xf8] sm:$0xff]   ;;  %v22_v36 = vld [vmem:[%s7272_s0 + $0x8] sm:$0xff] }
   0xc   :  { %4907 = vmatprep.subr.bf16.mxu0 %v5513_v12  ;;  %v5528_v27 = vld [vmem:[%s7271_s1 + $0xb0] sm:$0xff]   ;;  %v5534_v34 = vld [vmem:[%s7271_s1 + $0xb8] sm:$0xff]   ;;  %3393 = vmatprep.mubr.bf16.mxu0 %v4459_v33  ;;  %v4460_v37 = vcombine.low %v22_v36, %v22_v36  ;;  %v4461_v38 = vcombine.high %v22_v36, %v22_v36  ;;  %v5538_v39 = vld [vmem:[%s7271_s1 + $0x100] sm:$0xff]  }
   0xd   :  { %4928 = vmatpush3.bf16.msra.mxu1 %v5512_v11  ;;  %v5539_v40 = vld [vmem:[%s7271_s1 + $0x1c0] sm:$0xff]   ;;  %v5541_v42 = vld [vmem:[%s7271_s1 + $0x148] sm:$0xff]   ;;  %v5545_v46 = vld [vmem:[%s7271_s1 + $0x150] sm:$0xff]  }
   0xe   :  { %4929 = vmatprep.subr.bf16.mxu1 %v5515_v14  ;;  %3433 = vmatprep.mubr.bf16.mxu1 %v4461_v38  ;;  %v5540_v41 = vld [vmem:[%s7271_s1 + $0x180] sm:$0xff]   ;;  %v5542_v43 = vld [vmem:[%s7271_s1 + $0x108] sm:$0xff]   ;;  %v5546_v47 = vld [vmem:[%s7271_s1 + $0x110] sm:$0xff]  }
   0xf   :  { %4908 = vmatpush3.bf16.msra.mxu0 %v5514_v13  ;;  %v5543_v44 = vld [vmem:[%s7271_s1 + $0x1c8] sm:$0xff]   ;;  %v5547_v48 = vld [vmem:[%s7271_s1 + $0x1d0] sm:$0xff]   ;;  %v5549_v50 = vld [vmem:[%s7271_s1 + $0x158] sm:$0xff]  }
  0x10   :  { %4909 = vmatprep.subr.bf16.mxu0 %v5517_v16  ;;  %v5544_v45 = vld [vmem:[%s7271_s1 + $0x188] sm:$0xff]   ;;  %v5548_v49 = vld [vmem:[%s7271_s1 + $0x190] sm:$0xff]   ;;  %v5550_v51 = vld [vmem:[%s7271_s1 + $0x118] sm:$0xff]  }
  0x11   :  { %4930 = vmatpush3.bf16.msra.mxu1 %v5516_v15  ;;  %v5551_v52 = vld [vmem:[%s7271_s1 + $0x1d8] sm:$0xff]   ;;  %v5553_v54 = vld [vmem:[%s7271_s1 + $0x160] sm:$0xff]   ;;  %v5557_v58 = vld [vmem:[%s7271_s1 + $0x168] sm:$0xff]  }
  0x12   :  { %4931 = vmatprep.subr.bf16.mxu1 %v5519_v18  ;;  %v5552_v53 = vld [vmem:[%s7271_s1 + $0x198] sm:$0xff]   ;;  %v5554_v55 = vld [vmem:[%s7271_s1 + $0x120] sm:$0xff]   ;;  %v5558_v59 = vld [vmem:[%s7271_s1 + $0x128] sm:$0xff]  }
  0x13   :  { %4910 = vmatpush3.bf16.msra.mxu0 %v5518_v17  ;;  %v5555_v56 = vld [vmem:[%s7271_s1 + $0x1e0] sm:$0xff]   ;;  %v5559_v60 = vld [vmem:[%s7271_s1 + $0x1e8] sm:$0xff]   ;;  %v5561_v62 = vld [vmem:[%s7271_s1 + $0x170] sm:$0xff]  }
  0x14   :  { %4911 = vmatprep.subr.bf16.mxu0 %v5521_v20  ;;  %v5556_v57 = vld [vmem:[%s7271_s1 + $0x1a0] sm:$0xff]   ;;  %v5560_v61 = vld [vmem:[%s7271_s1 + $0x1a8] sm:$0xff]   ;;  %v5562_v63 = vld [vmem:[%s7271_s1 + $0x130] sm:$0xff]  }
  0x15   :  { %4932 = vmatpush3.bf16.msra.mxu1 %v5520_v19  ;;  %v5563_v0 = vld [vmem:[%s7271_s1 + $0x1f0] sm:$0xff]   ;;  %v5565_v2 = vld [vmem:[%s7271_s1 + $0x178] sm:$0xff]   ;;  %v5571_v9 = vld [vmem:[%s7271_s1 + $0x240] sm:$0xff]  }
  0x16   :  { %4933 = vmatprep.subr.bf16.mxu1 %v5523_v22  ;;  %v5564_v1 = vld [vmem:[%s7271_s1 + $0x1b0] sm:$0xff]   ;;  %v5566_v3 = vld [vmem:[%s7271_s1 + $0x138] sm:$0xff]   ;;  %v5574_v13 = vld [vmem:[%s7271_s1 + $0x200] sm:$0xff]  }
  0x17   :  { %4912 = vmatpush3.bf16.msra.mxu0 %v5522_v21  ;;  %v5567_v4 = vld [vmem:[%s7271_s1 + $0x1f8] sm:$0xff]   ;;  %v23_v5 = vld [vmem:[%s7272_s0 + $0x10] sm:$0xff]  ;;  %v5575_v14 = vld [vmem:[%s7271_s1 + $0x2c0] sm:$0xff]  }
  0x18   :  { %4913 = vmatprep.subr.bf16.mxu0 %v5525_v24  ;;  %v4462_v6 = vcombine.low %v23_v5, %v23_v5  ;;  %v4463_v7 = vcombine.high %v23_v5, %v23_v5  ;;  %v5570_v8 = vld [vmem:[%s7271_s1 + $0x1b8] sm:$0xff]   ;;  %v5576_v15 = vld [vmem:[%s7271_s1 + $0x280] sm:$0xff]   ;;  %v5577_v16 = vld [vmem:[%s7271_s1 + $0x248] sm:$0xff]  }
  0x19   :  { %4934 = vmatpush3.bf16.msra.mxu1 %v5524_v23  ;;  %v24_v10 = vld [vmem:[%s7272_s0 + $0x18] sm:$0xff]  ;;  %v5578_v17 = vld [vmem:[%s7271_s1 + $0x208] sm:$0xff]   ;;  %v5581_v20 = vld [vmem:[%s7271_s1 + $0x250] sm:$0xff]  }
  0x1a   :  { %4935 = vmatprep.subr.bf16.mxu1 %v5527_v26  ;;  %v4464_v11 = vcombine.low %v24_v10, %v24_v10  ;;  %v4465_v12 = vcombine.high %v24_v10, %v24_v10  ;;  %v5579_v18 = vld [vmem:[%s7271_s1 + $0x2c8] sm:$0xff]   ;;  %v5582_v21 = vld [vmem:[%s7271_s1 + $0x210] sm:$0xff]   ;;  %v5585_v24 = vld [vmem:[%s7271_s1 + $0x258] sm:$0xff]  }
  0x1b   :  { %4914 = vmatpush3.bf16.msra.mxu0 %v5526_v25  ;;  %v5580_v19 = vld [vmem:[%s7271_s1 + $0x288] sm:$0xff]   ;;  %v5583_v22 = vld [vmem:[%s7271_s1 + $0x2d0] sm:$0xff]   ;;  %v5586_v25 = vld [vmem:[%s7271_s1 + $0x218] sm:$0xff]  }
  0x1c   :  { %4915 = vmatprep.subr.bf16.mxu0 %v5529_v28  ;;  %v5584_v23 = vld [vmem:[%s7271_s1 + $0x290] sm:$0xff]   ;;  %v5587_v26 = vld [vmem:[%s7271_s1 + $0x2d8] sm:$0xff]   ;;  %v5589_v28 = vld [vmem:[%s7271_s1 + $0x260] sm:$0xff]  }
  0x1d   :  { %4936 = vmatpush3.bf16.msra.mxu1 %v5528_v27  ;;  %v5588_v27 = vld [vmem:[%s7271_s1 + $0x298] sm:$0xff]   ;;  %v5592_v31 = vld [vmem:[%s7271_s1 + $0x2a0] sm:$0xff]   ;;  %v5594_v33 = vld [vmem:[%s7271_s1 + $0x228] sm:$0xff]  }
  0x1e   :  { %4937 = vmatprep.subr.bf16.mxu1 %v5531_v30  ;;  %v5591_v30 = vld [vmem:[%s7271_s1 + $0x2e0] sm:$0xff]   ;;  %v5597_v36 = vld [vmem:[%s7271_s1 + $0x270] sm:$0xff]  }
  0x1f   :  { %4916 = vmatpush3.bf16.msra.mxu0 %v5530_v29  ;;  %v5590_v29 = vld [vmem:[%s7271_s1 + $0x220] sm:$0xff]   ;;  %v5599_v38 = vld [vmem:[%s7271_s1 + $0x2f0] sm:$0xff]  }
  0x20   :  { %4945 = vmatprep.subr.bf16.mxu0 %v5535_v35  ;;  %v5596_v35 = vld [vmem:[%s7271_s1 + $0x2a8] sm:$0xff]   ;;  %v5628_v5 = vld [vmem:[%s7271_s1 + $0x3a0] sm:$0xff]   ;;  %v5633_v10 = vld [vmem:[%s7271_s1 + $0x370] sm:$0xff]  }
  0x21   :  { %4938 = vmatpush3.bf16.msra.mxu1 %v5534_v34  ;;  %v5595_v34 = vld [vmem:[%s7271_s1 + $0x2e8] sm:$0xff]  }
  0x22   :  { %3394 = vmatmul.mubr.bf16.vlgmr.msra.gmra.mrb[0].mxu0 %v4458_v32  ;;  %4967 = vmatprep.subr.bf16.mxu1 %v5539_v40  ;;  %v5593_v32 = vld [vmem:[%s7271_s1 + $0x268] sm:$0xff]   ;;  %v5601_v40 = vld [vmem:[%s7271_s1 + $0x278] sm:$0xff]  }
  0x23   :  { %4946 = vmatpush3.bf16.msra.mxu0 %v5538_v39  ;;  %3473 = vmatprep.mubr.bf16.mxu0 %v4463_v7  ;;  %v5600_v39 = vld [vmem:[%s7271_s1 + $0x2b0] sm:$0xff]   ;;  %v5630_v7 = vld [vmem:[%s7271_s1 + $0x328] sm:$0xff]  }
  0x24   :  { %3434 = vmatmul.mubr.bf16.vlgmr.msra.gmra.mrb[0].mxu1 %v4460_v37  ;;  %4947 = vmatprep.subr.bf16.mxu0 %v5541_v42  ;;  %v5598_v37 = vld [vmem:[%s7271_s1 + $0x230] sm:$0xff]   ;;  %v5603_v42 = vld [vmem:[%s7271_s1 + $0x2f8] sm:$0xff]  }
  0x25   :  { %4968 = vmatpush3.bf16.msra.mxu1 %v5540_v41  ;;  %3513 = vmatprep.mubr.bf16.mxu1 %v4465_v12  ;;  %v5602_v41 = vld [vmem:[%s7271_s1 + $0x238] sm:$0xff]   ;;  %v5635_v12 = vld [vmem:[%s7271_s1 + $0x3f0] sm:$0xff]  }
  0x26   :  { %4969 = vmatprep.subr.bf16.mxu1 %v5543_v44 }
  0x27   :  { %4948 = vmatpush3.bf16.msra.mxu0 %v5542_v43  ;;  %v25_v43 = vld [vmem:[%s7272_s0 + $0x20] sm:$0xff] }
  0x28   :  { %4949 = vmatprep.subr.bf16.mxu0 %v5545_v46  ;;  %v4466_v44 = vcombine.low %v25_v43, %v25_v43  ;;  %v5606_v46 = vld [vmem:[%s7271_s1 + $0x2b8] sm:$0xff]  }
  0x29   :  { %4970 = vmatpush3.bf16.msra.mxu1 %v5544_v45  ;;  %v4467_v45 = vcombine.high %v25_v43, %v25_v43  ;;  %v5664_v43 = vld [vmem:[%s7271_s1 + $0x4a0] sm:$0xff]  }
  0x2a   :  { %4971 = vmatprep.subr.bf16.mxu1 %v5547_v48  ;;  %v26_v48 = vld [vmem:[%s7272_s0 + $0x28] sm:$0xff] }
  0x2b   :  { %4950 = vmatpush3.bf16.msra.mxu0 %v5546_v47  ;;  %v5607_v47 = vld [vmem:[%s7271_s1 + $0x340] sm:$0xff]  }
  0x2c   :  { %4951 = vmatprep.subr.bf16.mxu0 %v5549_v50  ;;  %v4469_v50 = vcombine.high %v26_v48, %v26_v48 }
  0x2d   :  { %4972 = vmatpush3.bf16.msra.mxu1 %v5548_v49  ;;  %v4468_v49 = vcombine.low %v26_v48, %v26_v48  ;;  %v5669_v48 = vld [vmem:[%s7271_s1 + $0x470] sm:$0xff]  }
  0x2e   :  { %4973 = vmatprep.subr.bf16.mxu1 %v5551_v52  ;;  %v5611_v52 = vld [vmem:[%s7271_s1 + $0x3c0] sm:$0xff]  }
  0x2f   :  { %4952 = vmatpush3.bf16.msra.mxu0 %v5550_v51  ;;  %v5610_v51 = vld [vmem:[%s7271_s1 + $0x300] sm:$0xff]  }
  0x30   :  { %4953 = vmatprep.subr.bf16.mxu0 %v5553_v54  ;;  %v5613_v54 = vld [vmem:[%s7271_s1 + $0x348] sm:$0xff]  }
  0x31   :  { %4974 = vmatpush3.bf16.msra.mxu1 %v5552_v53  ;;  %v5612_v53 = vld [vmem:[%s7271_s1 + $0x380] sm:$0xff]  }
  0x32   :  { %4975 = vmatprep.subr.bf16.mxu1 %v5555_v56  ;;  %v5615_v56 = vld [vmem:[%s7271_s1 + $0x3c8] sm:$0xff]  }
  0x33   :  { %4954 = vmatpush3.bf16.msra.mxu0 %v5554_v55  ;;  %v5614_v55 = vld [vmem:[%s7271_s1 + $0x308] sm:$0xff]  }
  0x34   :  { %4955 = vmatprep.subr.bf16.mxu0 %v5557_v58  ;;  %v5617_v58 = vld [vmem:[%s7271_s1 + $0x350] sm:$0xff]  }
  0x35   :  { %4976 = vmatpush3.bf16.msra.mxu1 %v5556_v57  ;;  %v5616_v57 = vld [vmem:[%s7271_s1 + $0x388] sm:$0xff]  }
  0x36   :  { %4977 = vmatprep.subr.bf16.mxu1 %v5559_v60  ;;  %v5619_v60 = vld [vmem:[%s7271_s1 + $0x3d0] sm:$0xff]  }
  0x37   :  { %4956 = vmatpush3.bf16.msra.mxu0 %v5558_v59  ;;  %v5618_v59 = vld [vmem:[%s7271_s1 + $0x310] sm:$0xff]  }
  0x38   :  { %4957 = vmatprep.subr.bf16.mxu0 %v5561_v62  ;;  %v5621_v62 = vld [vmem:[%s7271_s1 + $0x358] sm:$0xff]  }
  0x39   :  { %4978 = vmatpush3.bf16.msra.mxu1 %v5560_v61  ;;  %v5620_v61 = vld [vmem:[%s7271_s1 + $0x390] sm:$0xff]  }
  0x3a   :  { %4979 = vmatprep.subr.bf16.mxu1 %v5563_v0  ;;  %v5623_v0 = vld [vmem:[%s7271_s1 + $0x3d8] sm:$0xff]  }
  0x3b   :  { %4958 = vmatpush3.bf16.msra.mxu0 %v5562_v63  ;;  %v5622_v63 = vld [vmem:[%s7271_s1 + $0x318] sm:$0xff]  }
  0x3c   :  { %4959 = vmatprep.subr.bf16.mxu0 %v5565_v2  ;;  %v5625_v2 = vld [vmem:[%s7271_s1 + $0x360] sm:$0xff]  }
  0x3d   :  { %4980 = vmatpush3.bf16.msra.mxu1 %v5564_v1  ;;  %v5624_v1 = vld [vmem:[%s7271_s1 + $0x398] sm:$0xff]  }
  0x3e   :  { %4981 = vmatprep.subr.bf16.mxu1 %v5567_v4  ;;  %v5627_v4 = vld [vmem:[%s7271_s1 + $0x3e0] sm:$0xff]  }
  0x3f   :  { %4960 = vmatpush3.bf16.msra.mxu0 %v5566_v3  ;;  %v5626_v3 = vld [vmem:[%s7271_s1 + $0x320] sm:$0xff]  }
  0x40   :  { %4989 = vmatprep.subr.bf16.mxu0 %v5571_v9  ;;  %v5632_v9 = vld [vmem:[%s7271_s1 + $0x3a8] sm:$0xff]  }
  0x41   :  { %4982 = vmatpush3.bf16.msra.mxu1 %v5570_v8  ;;  %v5631_v8 = vld [vmem:[%s7271_s1 + $0x3e8] sm:$0xff]  }
  0x42   :  { %3474 = vmatmul.mubr.bf16.vlgmr.msra.gmra.mrb[4].mxu0 %v4462_v6  ;;  %5011 = vmatprep.subr.bf16.mxu1 %v5575_v14  ;;  %v5629_v6 = vld [vmem:[%s7271_s1 + $0x368] sm:$0xff]   ;;  %v5637_v14 = vld [vmem:[%s7271_s1 + $0x378] sm:$0xff]  }
  0x43   :  { %4990 = vmatpush3.bf16.msra.mxu0 %v5574_v13  ;;  %3553 = vmatprep.mubr.bf16.mxu0 %v4467_v45  ;;  %v5636_v13 = vld [vmem:[%s7271_s1 + $0x3b0] sm:$0xff]   ;;  %v5666_v45 = vld [vmem:[%s7271_s1 + $0x428] sm:$0xff]  }
  0x44   :  { %3514 = vmatmul.mubr.bf16.vlgmr.msra.gmra.mrb[4].mxu1 %v4464_v11  ;;  %4991 = vmatprep.subr.bf16.mxu0 %v5577_v16  ;;  %v5634_v11 = vld [vmem:[%s7271_s1 + $0x330] sm:$0xff]   ;;  %v5639_v16 = vld [vmem:[%s7271_s1 + $0x3f8] sm:$0xff]  }
  0x45   :  { %5012 = vmatpush3.bf16.msra.mxu1 %v5576_v15  ;;  %3593 = vmatprep.mubr.bf16.mxu1 %v4469_v50  ;;  %v5638_v15 = vld [vmem:[%s7271_s1 + $0x338] sm:$0xff]   ;;  %v5671_v50 = vld [vmem:[%s7271_s1 + $0x4f0] sm:$0xff]  }
  0x46   :  { %5013 = vmatprep.subr.bf16.mxu1 %v5579_v18 }
  0x47   :  { %4992 = vmatpush3.bf16.msra.mxu0 %v5578_v17  ;;  %v27_v17 = vld [vmem:[%s7272_s0 + $0x30] sm:$0xff] }
  0x48   :  { %4993 = vmatprep.subr.bf16.mxu0 %v5581_v20  ;;  %v4470_v18 = vcombine.low %v27_v17, %v27_v17  ;;  %v5642_v20 = vld [vmem:[%s7271_s1 + $0x3b8] sm:$0xff]  }
  0x49   :  { %5014 = vmatpush3.bf16.msra.mxu1 %v5580_v19  ;;  %v4471_v19 = vcombine.high %v27_v17, %v27_v17  ;;  %v5700_v17 = vld [vmem:[%s7271_s1 + $0x5a0] sm:$0xff]  }
  0x4a   :  { %5015 = vmatprep.subr.bf16.mxu1 %v5583_v22  ;;  %v28_v22 = vld [vmem:[%s7272_s0 + $0x38] sm:$0xff] }
  0x4b   :  { %4994 = vmatpush3.bf16.msra.mxu0 %v5582_v21  ;;  %v5643_v21 = vld [vmem:[%s7271_s1 + $0x440] sm:$0xff]  }
  0x4c   :  { %4995 = vmatprep.subr.bf16.mxu0 %v5585_v24  ;;  %v4473_v24 = vcombine.high %v28_v22, %v28_v22 }
  0x4d   :  { %5016 = vmatpush3.bf16.msra.mxu1 %v5584_v23  ;;  %v4472_v23 = vcombine.low %v28_v22, %v28_v22  ;;  %v5705_v22 = vld [vmem:[%s7271_s1 + $0x570] sm:$0xff]  }
  0x4e   :  { %5017 = vmatprep.subr.bf16.mxu1 %v5587_v26  ;;  %v5647_v26 = vld [vmem:[%s7271_s1 + $0x4c0] sm:$0xff]  }
  0x4f   :  { %4996 = vmatpush3.bf16.msra.mxu0 %v5586_v25  ;;  %v5646_v25 = vld [vmem:[%s7271_s1 + $0x400] sm:$0xff]  }
  0x50   :  { %4997 = vmatprep.subr.bf16.mxu0 %v5589_v28  ;;  %v5649_v28 = vld [vmem:[%s7271_s1 + $0x448] sm:$0xff]  }
  0x51   :  { %5018 = vmatpush3.bf16.msra.mxu1 %v5588_v27  ;;  %v5648_v27 = vld [vmem:[%s7271_s1 + $0x480] sm:$0xff]  }
  0x52   :  { %5019 = vmatprep.subr.bf16.mxu1 %v5591_v30  ;;  %v5651_v30 = vld [vmem:[%s7271_s1 + $0x4c8] sm:$0xff]  }
  0x53   :  { %4998 = vmatpush3.bf16.msra.mxu0 %v5590_v29  ;;  %v5650_v29 = vld [vmem:[%s7271_s1 + $0x408] sm:$0xff]  }
  0x54   :  { %4999 = vmatprep.subr.bf16.mxu0 %v5593_v32  ;;  %v5653_v32 = vld [vmem:[%s7271_s1 + $0x450] sm:$0xff]  }
  0x55   :  { %5020 = vmatpush3.bf16.msra.mxu1 %v5592_v31  ;;  %v5652_v31 = vld [vmem:[%s7271_s1 + $0x488] sm:$0xff]  }
  0x56   :  { %5021 = vmatprep.subr.bf16.mxu1 %v5595_v34  ;;  %v5655_v34 = vld [vmem:[%s7271_s1 + $0x4d0] sm:$0xff]  }
  0x57   :  { %5000 = vmatpush3.bf16.msra.mxu0 %v5594_v33  ;;  %v5654_v33 = vld [vmem:[%s7271_s1 + $0x410] sm:$0xff]  }
  0x58   :  { %5001 = vmatprep.subr.bf16.mxu0 %v5597_v36  ;;  %v5657_v36 = vld [vmem:[%s7271_s1 + $0x458] sm:$0xff]  }
  0x59   :  { %5022 = vmatpush3.bf16.msra.mxu1 %v5596_v35  ;;  %v5656_v35 = vld [vmem:[%s7271_s1 + $0x490] sm:$0xff]  }
  0x5a   :  { %5023 = vmatprep.subr.bf16.mxu1 %v5599_v38  ;;  %v5659_v38 = vld [vmem:[%s7271_s1 + $0x4d8] sm:$0xff]  }
  0x5b   :  { %5002 = vmatpush3.bf16.msra.mxu0 %v5598_v37  ;;  %v5658_v37 = vld [vmem:[%s7271_s1 + $0x418] sm:$0xff]  }
  0x5c   :  { %5003 = vmatprep.subr.bf16.mxu0 %v5601_v40  ;;  %v5661_v40 = vld [vmem:[%s7271_s1 + $0x460] sm:$0xff]  }
  0x5d   :  { %5024 = vmatpush3.bf16.msra.mxu1 %v5600_v39  ;;  %v5660_v39 = vld [vmem:[%s7271_s1 + $0x498] sm:$0xff]  }
  0x5e   :  { %5025 = vmatprep.subr.bf16.mxu1 %v5603_v42  ;;  %v5663_v42 = vld [vmem:[%s7271_s1 + $0x4e0] sm:$0xff]  }
  0x5f   :  { %5004 = vmatpush3.bf16.msra.mxu0 %v5602_v41  ;;  %v5662_v41 = vld [vmem:[%s7271_s1 + $0x420] sm:$0xff]  }
  0x60   :  { %5033 = vmatprep.subr.bf16.mxu0 %v5607_v47  ;;  %v5668_v47 = vld [vmem:[%s7271_s1 + $0x4a8] sm:$0xff]  }
  0x61   :  { %5026 = vmatpush3.bf16.msra.mxu1 %v5606_v46  ;;  %v5667_v46 = vld [vmem:[%s7271_s1 + $0x4e8] sm:$0xff]  }
  0x62   :  { %3554 = vmatmul.mubr.bf16.vlgmr.msra.gmra.mrb[8].mxu0 %v4466_v44  ;;  %5055 = vmatprep.subr.bf16.mxu1 %v5611_v52  ;;  %v5665_v44 = vld [vmem:[%s7271_s1 + $0x468] sm:$0xff]   ;;  %v5673_v52 = vld [vmem:[%s7271_s1 + $0x478] sm:$0xff]  }
  0x63   :  { %5034 = vmatpush3.bf16.msra.mxu0 %v5610_v51  ;;  %3633 = vmatprep.mubr.bf16.mxu0 %v4471_v19  ;;  %v5672_v51 = vld [vmem:[%s7271_s1 + $0x4b0] sm:$0xff]   ;;  %v5702_v19 = vld [vmem:[%s7271_s1 + $0x528] sm:$0xff]  }
  0x64   :  { %3594 = vmatmul.mubr.bf16.vlgmr.msra.gmra.mrb[8].mxu1 %v4468_v49  ;;  %5035 = vmatprep.subr.bf16.mxu0 %v5613_v54  ;;  %v5670_v49 = vld [vmem:[%s7271_s1 + $0x430] sm:$0xff]   ;;  %v5675_v54 = vld [vmem:[%s7271_s1 + $0x4f8] sm:$0xff]  }
  0x65   :  { %5056 = vmatpush3.bf16.msra.mxu1 %v5612_v53  ;;  %3673 = vmatprep.mubr.bf16.mxu1 %v4473_v24  ;;  %v5674_v53 = vld [vmem:[%s7271_s1 + $0x438] sm:$0xff]   ;;  %v5707_v24 = vld [vmem:[%s7271_s1 + $0x5f0] sm:$0xff]  }
  0x66   :  { %5057 = vmatprep.subr.bf16.mxu1 %v5615_v56 }
  0x67   :  { %5036 = vmatpush3.bf16.msra.mxu0 %v5614_v55  ;;  %v29_v55 = vld [vmem:[%s7272_s0 + $0x40] sm:$0xff] }
  0x68   :  { %5037 = vmatprep.subr.bf16.mxu0 %v5617_v58  ;;  %v4474_v56 = vcombine.low %v29_v55, %v29_v55  ;;  %v5678_v58 = vld [vmem:[%s7271_s1 + $0x4b8] sm:$0xff]  }
  0x69   :  { %5058 = vmatpush3.bf16.msra.mxu1 %v5616_v57  ;;  %v4475_v57 = vcombine.high %v29_v55, %v29_v55  ;;  %v5736_v55 = vld [vmem:[%s7271_s1 + $0x6a0] sm:$0xff]  }
  0x6a   :  { %5059 = vmatprep.subr.bf16.mxu1 %v5619_v60  ;;  %v30_v60 = vld [vmem:[%s7272_s0 + $0x48] sm:$0xff] }
  0x6b   :  { %5038 = vmatpush3.bf16.msra.mxu0 %v5618_v59  ;;  %v5679_v59 = vld [vmem:[%s7271_s1 + $0x540] sm:$0xff]  }
  0x6c   :  { %5039 = vmatprep.subr.bf16.mxu0 %v5621_v62  ;;  %v4477_v62 = vcombine.high %v30_v60, %v30_v60 }
  0x6d   :  { %5060 = vmatpush3.bf16.msra.mxu1 %v5620_v61  ;;  %v4476_v61 = vcombine.low %v30_v60, %v30_v60  ;;  %v5741_v60 = vld [vmem:[%s7271_s1 + $0x670] sm:$0xff]  }
  0x6e   :  { %5061 = vmatprep.subr.bf16.mxu1 %v5623_v0  ;;  %v5683_v0 = vld [vmem:[%s7271_s1 + $0x5c0] sm:$0xff]  }
  0x6f   :  { %5040 = vmatpush3.bf16.msra.mxu0 %v5622_v63  ;;  %v5682_v63 = vld [vmem:[%s7271_s1 + $0x500] sm:$0xff]  }
  0x70   :  { %5041 = vmatprep.subr.bf16.mxu0 %v5625_v2  ;;  %v5685_v2 = vld [vmem:[%s7271_s1 + $0x548] sm:$0xff]  }
  0x71   :  { %5062 = vmatpush3.bf16.msra.mxu1 %v5624_v1  ;;  %v5684_v1 = vld [vmem:[%s7271_s1 + $0x580] sm:$0xff]  }
  0x72   :  { %5063 = vmatprep.subr.bf16.mxu1 %v5627_v4  ;;  %v5687_v4 = vld [vmem:[%s7271_s1 + $0x5c8] sm:$0xff]  }
  0x73   :  { %5042 = vmatpush3.bf16.msra.mxu0 %v5626_v3  ;;  %v5686_v3 = vld [vmem:[%s7271_s1 + $0x508] sm:$0xff]  }
  0x74   :  { %5043 = vmatprep.subr.bf16.mxu0 %v5629_v6  ;;  %v5689_v6 = vld [vmem:[%s7271_s1 + $0x550] sm:$0xff]  }
  0x75   :  { %5064 = vmatpush3.bf16.msra.mxu1 %v5628_v5  ;;  %v5688_v5 = vld [vmem:[%s7271_s1 + $0x588] sm:$0xff]  }
  0x76   :  { %5065 = vmatprep.subr.bf16.mxu1 %v5631_v8  ;;  %v5691_v8 = vld [vmem:[%s7271_s1 + $0x5d0] sm:$0xff]  }
  0x77   :  { %5044 = vmatpush3.bf16.msra.mxu0 %v5630_v7  ;;  %v5690_v7 = vld [vmem:[%s7271_s1 + $0x510] sm:$0xff]  }
  0x78   :  { %5045 = vmatprep.subr.bf16.mxu0 %v5633_v10  ;;  %v5693_v10 = vld [vmem:[%s7271_s1 + $0x558] sm:$0xff]  }
  0x79   :  { %5066 = vmatpush3.bf16.msra.mxu1 %v5632_v9  ;;  %v5692_v9 = vld [vmem:[%s7271_s1 + $0x590] sm:$0xff]  }
  0x7a   :  { %5067 = vmatprep.subr.bf16.mxu1 %v5635_v12  ;;  %v5695_v12 = vld [vmem:[%s7271_s1 + $0x5d8] sm:$0xff]  }
  0x7b   :  { %5046 = vmatpush3.bf16.msra.mxu0 %v5634_v11  ;;  %v5694_v11 = vld [vmem:[%s7271_s1 + $0x518] sm:$0xff]  }
  0x7c   :  { %5047 = vmatprep.subr.bf16.mxu0 %v5637_v14  ;;  %v5697_v14 = vld [vmem:[%s7271_s1 + $0x560] sm:$0xff]  }
  0x7d   :  { %5068 = vmatpush3.bf16.msra.mxu1 %v5636_v13  ;;  %v5696_v13 = vld [vmem:[%s7271_s1 + $0x598] sm:$0xff]  }
  0x7e   :  { %5069 = vmatprep.subr.bf16.mxu1 %v5639_v16  ;;  %v5699_v16 = vld [vmem:[%s7271_s1 + $0x5e0] sm:$0xff]  }
  0x7f   :  { %5048 = vmatpush3.bf16.msra.mxu0 %v5638_v15  ;;  %v5698_v15 = vld [vmem:[%s7271_s1 + $0x520] sm:$0xff]  }
  0x80   :  { %5077 = vmatprep.subr.bf16.mxu0 %v5643_v21  ;;  %v5704_v21 = vld [vmem:[%s7271_s1 + $0x5a8] sm:$0xff]  }
  0x81   :  { %5070 = vmatpush3.bf16.msra.mxu1 %v5642_v20  ;;  %v5703_v20 = vld [vmem:[%s7271_s1 + $0x5e8] sm:$0xff]  }
  0x82   :  { %3634 = vmatmul.mubr.bf16.vlgmr.msra.gmra.mrb[12].mxu0 %v4470_v18  ;;  %5099 = vmatprep.subr.bf16.mxu1 %v5647_v26  ;;  %v5701_v18 = vld [vmem:[%s7271_s1 + $0x568] sm:$0xff]   ;;  %v5709_v26 = vld [vmem:[%s7271_s1 + $0x578] sm:$0xff]  }
  0x83   :  { %5078 = vmatpush3.bf16.msra.mxu0 %v5646_v25  ;;  %3713 = vmatprep.mubr.bf16.mxu0 %v4475_v57  ;;  %v5708_v25 = vld [vmem:[%s7271_s1 + $0x5b0] sm:$0xff]   ;;  %v5738_v57 = vld [vmem:[%s7271_s1 + $0x628] sm:$0xff]  }
  0x84   :  { %3674 = vmatmul.mubr.bf16.vlgmr.msra.gmra.mrb[12].mxu1 %v4472_v23  ;;  %5079 = vmatprep.subr.bf16.mxu0 %v5649_v28  ;;  %v5706_v23 = vld [vmem:[%s7271_s1 + $0x530] sm:$0xff]   ;;  %v5711_v28 = vld [vmem:[%s7271_s1 + $0x5f8] sm:$0xff]  }
  0x85   :  { %5100 = vmatpush3.bf16.msra.mxu1 %v5648_v27  ;;  %3753 = vmatprep.mubr.bf16.mxu1 %v4477_v62  ;;  %v5710_v27 = vld [vmem:[%s7271_s1 + $0x538] sm:$0xff]   ;;  %v5743_v62 = vld [vmem:[%s7271_s1 + $0x6f0] sm:$0xff]  }
  0x86   :  { %5101 = vmatprep.subr.bf16.mxu1 %v5651_v30 }
  0x87   :  { %5080 = vmatpush3.bf16.msra.mxu0 %v5650_v29  ;;  %v31_v29 = vld [vmem:[%s7272_s0 + $0x50] sm:$0xff] }
  0x88   :  { %5081 = vmatprep.subr.bf16.mxu0 %v5653_v32  ;;  %v4478_v30 = vcombine.low %v31_v29, %v31_v29  ;;  %v5714_v32 = vld [vmem:[%s7271_s1 + $0x5b8] sm:$0xff]  }
  0x89   :  { %5102 = vmatpush3.bf16.msra.mxu1 %v5652_v31  ;;  %v4479_v31 = vcombine.high %v31_v29, %v31_v29  ;;  %v5771_v29 = vld [vmem:[%s7271_s1 + $0x7e0] sm:$0xff]  }
  0x8a   :  { %5103 = vmatprep.subr.bf16.mxu1 %v5655_v34  ;;  %v32_v34 = vld [vmem:[%s7272_s0 + $0x58] sm:$0xff] }
  0x8b   :  { %5082 = vmatpush3.bf16.msra.mxu0 %v5654_v33  ;;  %v5715_v33 = vld [vmem:[%s7271_s1 + $0x640] sm:$0xff]  }
  0x8c   :  { %5083 = vmatprep.subr.bf16.mxu0 %v5657_v36  ;;  %v4481_v36 = vcombine.high %v32_v34, %v32_v34 }
  0x8d   :  { %5104 = vmatpush3.bf16.msra.mxu1 %v5656_v35  ;;  %v4480_v35 = vcombine.low %v32_v34, %v32_v34 }
  0x8e   :  { %5105 = vmatprep.subr.bf16.mxu1 %v5659_v38  ;;  %v5719_v38 = vld [vmem:[%s7271_s1 + $0x6c0] sm:$0xff]  }
  0x8f   :  { %5084 = vmatpush3.bf16.msra.mxu0 %v5658_v37  ;;  %v5718_v37 = vld [vmem:[%s7271_s1 + $0x600] sm:$0xff]  }
  0x90   :  { %5085 = vmatprep.subr.bf16.mxu0 %v5661_v40  ;;  %v5721_v40 = vld [vmem:[%s7271_s1 + $0x648] sm:$0xff]  }
  0x91   :  { %5106 = vmatpush3.bf16.msra.mxu1 %v5660_v39  ;;  %v5720_v39 = vld [vmem:[%s7271_s1 + $0x680] sm:$0xff]  }
  0x92   :  { %5107 = vmatprep.subr.bf16.mxu1 %v5663_v42  ;;  %v5723_v42 = vld [vmem:[%s7271_s1 + $0x6c8] sm:$0xff]  }
  0x93   :  { %5086 = vmatpush3.bf16.msra.mxu0 %v5662_v41  ;;  %v5722_v41 = vld [vmem:[%s7271_s1 + $0x608] sm:$0xff]  }
  0x94   :  { %5087 = vmatprep.subr.bf16.mxu0 %v5665_v44  ;;  %v5725_v44 = vld [vmem:[%s7271_s1 + $0x650] sm:$0xff]  }
  0x95   :  { %5108 = vmatpush3.bf16.msra.mxu1 %v5664_v43  ;;  %v5724_v43 = vld [vmem:[%s7271_s1 + $0x688] sm:$0xff]  }
  0x96   :  { %5109 = vmatprep.subr.bf16.mxu1 %v5667_v46  ;;  %v5727_v46 = vld [vmem:[%s7271_s1 + $0x6d0] sm:$0xff]  }
  0x97   :  { %5088 = vmatpush3.bf16.msra.mxu0 %v5666_v45  ;;  %v5726_v45 = vld [vmem:[%s7271_s1 + $0x610] sm:$0xff]  }
  0x98   :  { %5089 = vmatprep.subr.bf16.mxu0 %v5669_v48  ;;  %v5729_v48 = vld [vmem:[%s7271_s1 + $0x658] sm:$0xff]  }
  0x99   :  { %5110 = vmatpush3.bf16.msra.mxu1 %v5668_v47  ;;  %v5728_v47 = vld [vmem:[%s7271_s1 + $0x690] sm:$0xff]  }
  0x9a   :  { %5111 = vmatprep.subr.bf16.mxu1 %v5671_v50  ;;  %v5731_v50 = vld [vmem:[%s7271_s1 + $0x6d8] sm:$0xff]  }
  0x9b   :  { %5090 = vmatpush3.bf16.msra.mxu0 %v5670_v49  ;;  %v5730_v49 = vld [vmem:[%s7271_s1 + $0x618] sm:$0xff]  }
  0x9c   :  { %5091 = vmatprep.subr.bf16.mxu0 %v5673_v52  ;;  %v5733_v52 = vld [vmem:[%s7271_s1 + $0x660] sm:$0xff]  }
  0x9d   :  { %5112 = vmatpush3.bf16.msra.mxu1 %v5672_v51  ;;  %v5732_v51 = vld [vmem:[%s7271_s1 + $0x698] sm:$0xff]  }
  0x9e   :  { %5113 = vmatprep.subr.bf16.mxu1 %v5675_v54  ;;  %v5735_v54 = vld [vmem:[%s7271_s1 + $0x6e0] sm:$0xff]  }
  0x9f   :  { %5092 = vmatpush3.bf16.msra.mxu0 %v5674_v53  ;;  %v5734_v53 = vld [vmem:[%s7271_s1 + $0x620] sm:$0xff]  }
  0xa0   :  { %5121 = vmatprep.subr.bf16.mxu0 %v5679_v59  ;;  %v5740_v59 = vld [vmem:[%s7271_s1 + $0x6a8] sm:$0xff]  }
  0xa1   :  { %5114 = vmatpush3.bf16.msra.mxu1 %v5678_v58  ;;  %v5739_v58 = vld [vmem:[%s7271_s1 + $0x6e8] sm:$0xff]  }
  0xa2   :  { %3714 = vmatmul.mubr.bf16.vlgmr.msra.gmra.mrb[16].mxu0 %v4474_v56  ;;  %5143 = vmatprep.subr.bf16.mxu1 %v5683_v0  ;;  %v5737_v56 = vld [vmem:[%s7271_s1 + $0x668] sm:$0xff]   ;;  %v5745_v0 = vld [vmem:[%s7271_s1 + $0x678] sm:$0xff]  }
  0xa3   :  { %5122 = vmatpush3.bf16.msra.mxu0 %v5682_v63  ;;  %3793 = vmatprep.mubr.bf16.mxu0 %v4479_v31  ;;  %v5744_v63 = vld [vmem:[%s7271_s1 + $0x6b0] sm:$0xff]   ;;  %v5772_v31 = vld [vmem:[%s7271_s1 + $0x7a0] sm:$0xff]  }
  0xa4   :  { %3754 = vmatmul.mubr.bf16.vlgmr.msra.gmra.mrb[16].mxu1 %v4476_v61  ;;  %5123 = vmatprep.subr.bf16.mxu0 %v5685_v2  ;;  %v5742_v61 = vld [vmem:[%s7271_s1 + $0x630] sm:$0xff]   ;;  %v5747_v2 = vld [vmem:[%s7271_s1 + $0x6f8] sm:$0xff]  }
  0xa5   :  { %5144 = vmatpush3.bf16.msra.mxu1 %v5684_v1  ;;  %3833 = vmatprep.mubr.bf16.mxu1 %v4481_v36  ;;  %v5746_v1 = vld [vmem:[%s7271_s1 + $0x638] sm:$0xff]  }
  0xa6   :  { %5145 = vmatprep.subr.bf16.mxu1 %v5687_v4 }
  0xa7   :  { %5124 = vmatpush3.bf16.msra.mxu0 %v5686_v3  ;;  %v33_v3 = vld [vmem:[%s7272_s0 + $0x60] sm:$0xff] }
  0xa8   :  { %5125 = vmatprep.subr.bf16.mxu0 %v5689_v6  ;;  %v4482_v4 = vcombine.low %v33_v3, %v33_v3  ;;  %v5750_v6 = vld [vmem:[%s7271_s1 + $0x6b8] sm:$0xff]  }
  0xa9   :  { %5146 = vmatpush3.bf16.msra.mxu1 %v5688_v5  ;;  %v4483_v5 = vcombine.high %v33_v3, %v33_v3  ;;  %v5795_v3 = vld [vmem:[%s7271_s1 + $0x8c8] sm:$0xff]  }
  0xaa   :  { %5147 = vmatprep.subr.bf16.mxu1 %v5691_v8  ;;  %v34_v8 = vld [vmem:[%s7272_s0 + $0x68] sm:$0xff] }
  0xab   :  { %5126 = vmatpush3.bf16.msra.mxu0 %v5690_v7  ;;  %v5751_v7 = vld [vmem:[%s7271_s1 + $0x740] sm:$0xff]  }
  0xac   :  { %5127 = vmatprep.subr.bf16.mxu0 %v5693_v10  ;;  %v4485_v10 = vcombine.high %v34_v8, %v34_v8 }
  0xad   :  { %5148 = vmatpush3.bf16.msra.mxu1 %v5692_v9  ;;  %v4484_v9 = vcombine.low %v34_v8, %v34_v8  ;;  %v5800_v8 = vld [vmem:[%s7271_s1 + $0x890] sm:$0xff]  }
  0xae   :  { %5149 = vmatprep.subr.bf16.mxu1 %v5695_v12  ;;  %v5755_v12 = vld [vmem:[%s7271_s1 + $0x7c0] sm:$0xff]  }
  0xaf   :  { %5128 = vmatpush3.bf16.msra.mxu0 %v5694_v11  ;;  %v5754_v11 = vld [vmem:[%s7271_s1 + $0x700] sm:$0xff]  }
  0xb0   :  { %5129 = vmatprep.subr.bf16.mxu0 %v5697_v14  ;;  %v5757_v14 = vld [vmem:[%s7271_s1 + $0x748] sm:$0xff]  }
  0xb1   :  { %5150 = vmatpush3.bf16.msra.mxu1 %v5696_v13  ;;  %v5756_v13 = vld [vmem:[%s7271_s1 + $0x780] sm:$0xff]  }
  0xb2   :  { %5151 = vmatprep.subr.bf16.mxu1 %v5699_v16  ;;  %v5759_v16 = vld [vmem:[%s7271_s1 + $0x7c8] sm:$0xff]  }
  0xb3   :  { %5130 = vmatpush3.bf16.msra.mxu0 %v5698_v15  ;;  %v5758_v15 = vld [vmem:[%s7271_s1 + $0x708] sm:$0xff]  }
  0xb4   :  { %5131 = vmatprep.subr.bf16.mxu0 %v5701_v18  ;;  %v5761_v18 = vld [vmem:[%s7271_s1 + $0x750] sm:$0xff]  }
  0xb5   :  { %5152 = vmatpush3.bf16.msra.mxu1 %v5700_v17  ;;  %v5760_v17 = vld [vmem:[%s7271_s1 + $0x788] sm:$0xff]  }
  0xb6   :  { %5153 = vmatprep.subr.bf16.mxu1 %v5703_v20  ;;  %v5763_v20 = vld [vmem:[%s7271_s1 + $0x7d0] sm:$0xff]  }
  0xb7   :  { %5132 = vmatpush3.bf16.msra.mxu0 %v5702_v19  ;;  %v5762_v19 = vld [vmem:[%s7271_s1 + $0x710] sm:$0xff]  }
  0xb8   :  { %5133 = vmatprep.subr.bf16.mxu0 %v5705_v22  ;;  %v5765_v22 = vld [vmem:[%s7271_s1 + $0x758] sm:$0xff]  }
  0xb9   :  { %5154 = vmatpush3.bf16.msra.mxu1 %v5704_v21  ;;  %v5764_v21 = vld [vmem:[%s7271_s1 + $0x790] sm:$0xff]  }
  0xba   :  { %5155 = vmatprep.subr.bf16.mxu1 %v5707_v24  ;;  %v5767_v24 = vld [vmem:[%s7271_s1 + $0x7d8] sm:$0xff]  }
  0xbb   :  { %5134 = vmatpush3.bf16.msra.mxu0 %v5706_v23  ;;  %v5766_v23 = vld [vmem:[%s7271_s1 + $0x718] sm:$0xff]  }
  0xbc   :  { %5135 = vmatprep.subr.bf16.mxu0 %v5709_v26  ;;  %v5769_v26 = vld [vmem:[%s7271_s1 + $0x760] sm:$0xff]  }
  0xbd   :  { %5156 = vmatpush3.bf16.msra.mxu1 %v5708_v25  ;;  %v5768_v25 = vld [vmem:[%s7271_s1 + $0x798] sm:$0xff]  }
  0xbe   :  { %5157 = vmatprep.subr.bf16.mxu1 %v5711_v28 }
  0xbf   :  { %5136 = vmatpush3.bf16.msra.mxu0 %v5710_v27  ;;  %v5770_v27 = vld [vmem:[%s7271_s1 + $0x720] sm:$0xff]  }
  0xc0   :  { %5165 = vmatprep.subr.bf16.mxu0 %v5715_v33 }
  0xc1   :  { %5158 = vmatpush3.bf16.msra.mxu1 %v5714_v32  ;;  %v4457_v32 = vld [vmem:[%s7273_s2] ss:$0 sm:$0xff] }
  0xc2   :  { %3794 = vmatmul.mubr.bf16.vlgmr.msra.gmra.mrb[20].mxu0 %v4478_v30  ;;  %5187 = vmatprep.subr.bf16.mxu1 %v5719_v38  ;;  %v5774_v38 = vld [vmem:[%s7271_s1 + $0x728] sm:$0xff]  }
  0xc3   :  { %5166 = vmatpush3.bf16.msra.mxu0 %v5718_v37  ;;  %3873 = vmatprep.mubr.bf16.mxu0 %v4483_v5  ;;  %v5797_v5 = vld [vmem:[%s7271_s1 + $0x850] sm:$0xff]  }
  0xc4   :  { %3834 = vmatmul.mubr.bf16.vlgmr.msra.gmra.mrb[20].mxu1 %v4480_v35  ;;  %5167 = vmatprep.subr.bf16.mxu0 %v5721_v40  ;;  %v5773_v35 = vld [vmem:[%s7271_s1 + $0x768] sm:$0xff]  }
  0xc5   :  { %5188 = vmatpush3.bf16.msra.mxu1 %v5720_v39  ;;  %3913 = vmatprep.mubr.bf16.mxu1 %v4485_v10  ;;  %v5802_v10 = vld [vmem:[%s7271_s1 + $0x818] sm:$0xff]  }
  0xc6   :  { %5189 = vmatprep.subr.bf16.mxu1 %v5723_v42 }
  0xc7   :  { %5168 = vmatpush3.bf16.msra.mxu0 %v5722_v41  ;;  %v5775_v41 = vld [vmem:[%s7271_s1 + $0x7e8] sm:$0xff]  }
  0xc8   :  { %5169 = vmatprep.subr.bf16.mxu0 %v5725_v44 }
  0xc9   :  { %5190 = vmatpush3.bf16.msra.mxu1 %v5724_v43  ;;  %v5776_v43 = vld [vmem:[%s7271_s1 + $0x7a8] sm:$0xff]  }
  0xca   :  { %5191 = vmatprep.subr.bf16.mxu1 %v5727_v46 }
  0xcb   :  { %5170 = vmatpush3.bf16.msra.mxu0 %v5726_v45  ;;  %v5777_v45 = vld [vmem:[%s7271_s1 + $0x770] sm:$0xff]  }
  0xcc   :  { %5171 = vmatprep.subr.bf16.mxu0 %v5729_v48  ;;  %v5778_v48 = vld [vmem:[%s7271_s1 + $0x730] sm:$0xff]  }
  0xcd   :  { %5192 = vmatpush3.bf16.msra.mxu1 %v5728_v47 }
  0xce   :  { %5193 = vmatprep.subr.bf16.mxu1 %v5731_v50  ;;  %v5780_v50 = vld [vmem:[%s7271_s1 + $0x7b0] sm:$0xff]  }
  0xcf   :  { %5172 = vmatpush3.bf16.msra.mxu0 %v5730_v49  ;;  %v5779_v49 = vld [vmem:[%s7271_s1 + $0x7f0] sm:$0xff]  }
  0xd0   :  { %5173 = vmatprep.subr.bf16.mxu0 %v5733_v52  ;;  %v5782_v52 = vld [vmem:[%s7271_s1 + $0x738] sm:$0xff]  }
  0xd1   :  { %5194 = vmatpush3.bf16.msra.mxu1 %v5732_v51  ;;  %v5781_v51 = vld [vmem:[%s7271_s1 + $0x778] sm:$0xff]  }
  0xd2   :  { %5195 = vmatprep.subr.bf16.mxu1 %v5735_v54  ;;  %v35_v54 = vld [vmem:[%s7272_s0 + $0x70] sm:$0xff] }
  0xd3   :  { %5174 = vmatpush3.bf16.msra.mxu0 %v5734_v53  ;;  %v5783_v53 = vld [vmem:[%s7271_s1 + $0x7f8] sm:$0xff]  }
  0xd4   :  { %5175 = vmatprep.subr.bf16.mxu0 %v5737_v56  ;;  %v4487_v56 = vcombine.high %v35_v54, %v35_v54 }
  0xd5   :  { %5196 = vmatpush3.bf16.msra.mxu1 %v5736_v55  ;;  %v4486_v55 = vcombine.low %v35_v54, %v35_v54  ;;  %v5832_v54 = vld [vmem:[%s7271_s1 + $0x988] sm:$0xff]  }
  0xd6   :  { %5197 = vmatprep.subr.bf16.mxu1 %v5739_v58  ;;  %v5787_v58 = vld [vmem:[%s7271_s1 + $0x840] sm:$0xff]  }
  0xd7   :  { %5176 = vmatpush3.bf16.msra.mxu0 %v5738_v57  ;;  %v5786_v57 = vld [vmem:[%s7271_s1 + $0x7b8] sm:$0xff]  }
  0xd8   :  { %5177 = vmatprep.subr.bf16.mxu0 %v5741_v60 }
  0xd9   :  { %5198 = vmatpush3.bf16.msra.mxu1 %v5740_v59  ;;  %v36_v59 = vld [vmem:[%s7272_s0 + $0x78] sm:$0xff] }
  0xda   :  { %5199 = vmatprep.subr.bf16.mxu1 %v5743_v62  ;;  %v4488_v60 = vcombine.low %v36_v59, %v36_v59  ;;  %v5790_v62 = vld [vmem:[%s7271_s1 + $0x800] sm:$0xff]  }
  0xdb   :  { %5178 = vmatpush3.bf16.msra.mxu0 %v5742_v61  ;;  %v4489_v61 = vcombine.high %v36_v59, %v36_v59  ;;  %v5837_v59 = vld [vmem:[%s7271_s1 + $0x958] sm:$0xff]  }
  0xdc   :  { %5179 = vmatprep.subr.bf16.mxu0 %v5745_v0  ;;  %v5792_v0 = vld [vmem:[%s7271_s1 + $0x880] sm:$0xff]  }
  0xdd   :  { %5200 = vmatpush3.bf16.msra.mxu1 %v5744_v63  ;;  %v5791_v63 = vld [vmem:[%s7271_s1 + $0x8c0] sm:$0xff]  }
  0xde   :  { %5201 = vmatprep.subr.bf16.mxu1 %v5747_v2  ;;  %v5794_v2 = vld [vmem:[%s7271_s1 + $0x808] sm:$0xff]  }
  0xdf   :  { %5180 = vmatpush3.bf16.msra.mxu0 %v5746_v1  ;;  %v5793_v1 = vld [vmem:[%s7271_s1 + $0x848] sm:$0xff]  }
  0xe0   :  { %5209 = vmatprep.subr.bf16.mxu0 %v5751_v7  ;;  %v5799_v7 = vld [vmem:[%s7271_s1 + $0x8d0] sm:$0xff]  }
  0xe1   :  { %5202 = vmatpush3.bf16.msra.mxu1 %v5750_v6  ;;  %v5798_v6 = vld [vmem:[%s7271_s1 + $0x810] sm:$0xff]  }
  0xe2   :  { %3874 = vmatmul.mubr.bf16.vlgmr.msra.gmra.mrb[24].mxu0 %v4482_v4  ;;  %5231 = vmatprep.subr.bf16.mxu1 %v5755_v12  ;;  %v5796_v4 = vld [vmem:[%s7271_s1 + $0x888] sm:$0xff]   ;;  %v5804_v12 = vld [vmem:[%s7271_s1 + $0x898] sm:$0xff]  }
  0xe3   :  { %5210 = vmatpush3.bf16.msra.mxu0 %v5754_v11  ;;  %3953 = vmatprep.mubr.bf16.mxu0 %v4487_v56  ;;  %v5803_v11 = vld [vmem:[%s7271_s1 + $0x8d8] sm:$0xff]   ;;  %v5834_v56 = vld [vmem:[%s7271_s1 + $0x910] sm:$0xff]  }
  0xe4   :  { %3914 = vmatmul.mubr.bf16.vlgmr.msra.gmra.mrb[24].mxu1 %v4484_v9  ;;  %5211 = vmatprep.subr.bf16.mxu0 %v5757_v14  ;;  %v5801_v9 = vld [vmem:[%s7271_s1 + $0x858] sm:$0xff]  }
  0xe5   :  { %5232 = vmatpush3.bf16.msra.mxu1 %v5756_v13  ;;  %3993 = vmatprep.mubr.bf16.mxu1 %v4489_v61  ;;  %v5805_v13 = vld [vmem:[%s7271_s1 + $0x860] sm:$0xff]   ;;  %v5839_v61 = vld [vmem:[%s7271_s1 + $0x9d8] sm:$0xff]  }
  0xe6   :  { %5233 = vmatprep.subr.bf16.mxu1 %v5759_v16 }
  0xe7   :  { %5212 = vmatpush3.bf16.msra.mxu0 %v5758_v15  ;;  %v5806_v15 = vld [vmem:[%s7271_s1 + $0x820] sm:$0xff]  }
  0xe8   :  { %5213 = vmatprep.subr.bf16.mxu0 %v5761_v18 }
  0xe9   :  { %5234 = vmatpush3.bf16.msra.mxu1 %v5760_v17  ;;  %v5807_v17 = vld [vmem:[%s7271_s1 + $0x8e0] sm:$0xff]  }
  0xea   :  { %5235 = vmatprep.subr.bf16.mxu1 %v5763_v20  ;;  %v5808_v20 = vld [vmem:[%s7271_s1 + $0x8a0] sm:$0xff]  }
  0xeb   :  { %5214 = vmatpush3.bf16.msra.mxu0 %v5762_v19 }
  0xec   :  { %5215 = vmatprep.subr.bf16.mxu0 %v5765_v22 }
  0xed   :  { %5236 = vmatpush3.bf16.msra.mxu1 %v5764_v21 }
  0xee   :  { %5237 = vmatprep.subr.bf16.mxu1 %v5767_v24 }
  0xef   :  { %5216 = vmatpush3.bf16.msra.mxu0 %v5766_v23  ;;  %v5809_v23 = vld [vmem:[%s7271_s1 + $0x868] sm:$0xff]  }
  0xf0   :  { %5217 = vmatprep.subr.bf16.mxu0 %v5769_v26 }
  0xf1   :  { %5238 = vmatpush3.bf16.msra.mxu1 %v5768_v25  ;;  %v5810_v25 = vld [vmem:[%s7271_s1 + $0x828] sm:$0xff]  }
  0xf2   :  { %5239 = vmatprep.subr.bf16.mxu1 %v5771_v29 }
  0xf3   :  { %5218 = vmatpush3.bf16.msra.mxu0 %v5770_v27 }
  0xf4   :  { %5219 = vmatprep.subr.bf16.mxu0 %v5773_v35  ;;  %v5815_v35 = vld [vmem:[%s7271_s1 + $0x8f0] sm:$0xff]  }
  0xf5   :  { %v4917_v28 = vpop.f32.mrb[0].mxu0  ;;  %5240 = vmatpush3.bf16.msra.mxu1 %v5772_v31 }
  0xf6   :  { %v4918_v30 = vpop.f32.mrb[1].mxu0  ;;  %5241 = vmatprep.subr.bf16.mxu1 %v5775_v41 }
  0xf7   :  { %v4919_v33 = vadd.f32 %v4918_v30, %v4917_v28  ;;  %v4920_v34 = vpop.f32.mrb[2].mxu0  ;;  %v4939_v36 = vpop.f32.mrb[0].mxu1  ;;  %5220 = vmatpush3.bf16.msra.mxu0 %v5774_v38  ;;  %v5811_v28 = vld [vmem:[%s7271_s1 + $0x8e8] sm:$0xff]   ;;  %v5818_v38 = vld [vmem:[%s7271_s1 + $0x838] sm:$0xff]  }
  0xf8   :  { %v4921_v39 = vpop.f32.mrb[3].mxu0  ;;  %v4940_v40 = vpop.f32.mrb[1].mxu1  ;;  %5221 = vmatprep.subr.bf16.mxu0 %v5777_v45  ;;  %v5812_v30 = vld [vmem:[%s7271_s1 + $0x8a8] sm:$0xff]   ;;  %v5814_v34 = vld [vmem:[%s7271_s1 + $0x830] sm:$0xff]  }
  0xf9   :  { %v3396_v37 = vadd.f32 %v4919_v33, %v4457_v32  ;;  %v4941_v42 = vadd.f32 %v4940_v40, %v4939_v36  ;;  %v4942_v44 = vpop.f32.mrb[2].mxu1  ;;  %5242 = vmatpush3.bf16.msra.mxu1 %v5776_v43  ;;  %v5813_v33 = vld [vmem:[%s7271_s1 + $0x870] sm:$0xff]   ;;  %v5819_v39 = vld [vmem:[%s7271_s1 + $0x8f8] sm:$0xff]   ;;  %v37_v40 = vld [vmem:[%s7272_s0 + $0x80] sm:$0xff] }
  0xfa   :  { %v4943_v46 = vpop.f32.mrb[3].mxu1  ;;  %5243 = vmatprep.subr.bf16.mxu1 %v5779_v49  ;;  %v5816_v36 = vld [vmem:[%s7271_s1 + $0x8b0] sm:$0xff]   ;;  %v4490_v41 = vcombine.low %v37_v40, %v37_v40  ;;  %v5822_v43 = vld [vmem:[%s7271_s1 + $0x8b8] sm:$0xff]   ;;  %v5823_v44 = vld [vmem:[%s7271_s1 + $0x940] sm:$0xff]  }
  0xfb   :  { %v6767_v47 = vadd.f32 %v4941_v42, %v3396_v37  ;;  %5222 = vmatpush3.bf16.msra.mxu0 %v5778_v48  ;;  %v5817_v37 = vld [vmem:[%s7271_s1 + $0x878] sm:$0xff]   ;;  %v4491_v42 = vcombine.high %v37_v40, %v37_v40  ;;  %v38_v45 = vld [vmem:[%s7272_s0 + $0x88] sm:$0xff]  ;;  %v5826_v48 = vld [vmem:[%s7271_s1 + $0x900] sm:$0xff]  }
  0xfc   :  { %5223 = vmatprep.subr.bf16.mxu0 %v5781_v51  ;;  %v4492_v46 = vcombine.low %v38_v45, %v38_v45  ;;  %v5827_v49 = vld [vmem:[%s7271_s1 + $0x9c0] sm:$0xff]   ;;  %v5829_v51 = vld [vmem:[%s7271_s1 + $0x948] sm:$0xff]  }
  0xfd   :  { %5244 = vmatpush3.bf16.msra.mxu1 %v5780_v50  ;;  %v5828_v50 = vld [vmem:[%s7271_s1 + $0x980] sm:$0xff]   ;;  %v5868_v40 = vld [vmem:[%s7271_s1 + $0xa88] sm:$0xff]  }
  0xfe   :  { %5245 = vmatprep.subr.bf16.mxu1 %v5783_v53  ;;  %v5831_v53 = vld [vmem:[%s7271_s1 + $0x9c8] sm:$0xff]  }
  0xff   :  { %5224 = vmatpush3.bf16.msra.mxu0 %v5782_v52  ;;  %v5830_v52 = vld [vmem:[%s7271_s1 + $0x908] sm:$0xff]  }
 0x100   :  { %5253 = vmatprep.subr.bf16.mxu0 %v5787_v58  ;;  %v5836_v58 = vld [vmem:[%s7271_s1 + $0x990] sm:$0xff]  }
 0x101   :  { %5246 = vmatpush3.bf16.msra.mxu1 %v5786_v57  ;;  %v5835_v57 = vld [vmem:[%s7271_s1 + $0x9d0] sm:$0xff]  }
 0x102   :  { %3954 = vmatmul.mubr.bf16.vlgmr.msra.gmra.mrb[28].mxu0 %v4486_v55  ;;  %5275 = vmatprep.subr.bf16.mxu1 %v5791_v63  ;;  %v5833_v55 = vld [vmem:[%s7271_s1 + $0x950] sm:$0xff]   ;;  %v5841_v63 = vld [vmem:[%s7271_s1 + $0x960] sm:$0xff]  }
 0x103   :  { %5254 = vmatpush3.bf16.msra.mxu0 %v5790_v62  ;;  %4033 = vmatprep.mubr.bf16.mxu0 %v4491_v42  ;;  %v5840_v62 = vld [vmem:[%s7271_s1 + $0x998] sm:$0xff]   ;;  %v5870_v42 = vld [vmem:[%s7271_s1 + $0xa10] sm:$0xff]  }
 0x104   :  { %3994 = vmatmul.mubr.bf16.vlgmr.msra.gmra.mrb[28].mxu1 %v4488_v60  ;;  %5255 = vmatprep.subr.bf16.mxu0 %v5793_v1  ;;  %v5838_v60 = vld [vmem:[%s7271_s1 + $0x918] sm:$0xff]   ;;  %v5842_v1 = vld [vmem:[%s7271_s1 + $0x920] sm:$0xff]  }
 0x105   :  { %5276 = vmatpush3.bf16.msra.mxu1 %v5792_v0 }
 0x106   :  { %5277 = vmatprep.subr.bf16.mxu1 %v5795_v3  ;;  %v5843_v3 = vld [vmem:[%s7271_s1 + $0x9e0] sm:$0xff]  }
 0x107   :  { %5256 = vmatpush3.bf16.msra.mxu0 %v5794_v2 }
 0x108   :  { %5257 = vmatprep.subr.bf16.mxu0 %v5797_v5 }
 0x109   :  { %5278 = vmatpush3.bf16.msra.mxu1 %v5796_v4 }
 0x10a   :  { %5279 = vmatprep.subr.bf16.mxu1 %v5799_v7 }
 0x10b   :  { %5258 = vmatpush3.bf16.msra.mxu0 %v5798_v6  ;;  %v5844_v6 = vld [vmem:[%s7271_s1 + $0x9a0] sm:$0xff]  }
 0x10c   :  { %5259 = vmatprep.subr.bf16.mxu0 %v5801_v9  ;;  %v5845_v9 = vld [vmem:[%s7271_s1 + $0x968] sm:$0xff]  }
 0x10d   :  { %5280 = vmatpush3.bf16.msra.mxu1 %v5800_v8 }
 0x10e   :  { %5281 = vmatprep.subr.bf16.mxu1 %v5803_v11  ;;  %v5846_v11 = vld [vmem:[%s7271_s1 + $0x928] sm:$0xff]  }
 0x10f   :  { %5260 = vmatpush3.bf16.msra.mxu0 %v5802_v10 }
 0x110   :  { %5261 = vmatprep.subr.bf16.mxu0 %v5805_v13 }
 0x111   :  { %5282 = vmatpush3.bf16.msra.mxu1 %v5804_v12 }
 0x112   :  { %5283 = vmatprep.subr.bf16.mxu1 %v5807_v17 }
 0x113   :  { %5262 = vmatpush3.bf16.msra.mxu0 %v5806_v15 }
 0x114   :  { %5263 = vmatprep.subr.bf16.mxu0 %v5809_v23  ;;  %v5853_v23 = vld [vmem:[%s7271_s1 + $0x978] sm:$0xff]  }
 0x115   :  { %v4961_v14 = vpop.f32.mrb[4].mxu0  ;;  %5284 = vmatpush3.bf16.msra.mxu1 %v5808_v20  ;;  %v5850_v20 = vld [vmem:[%s7271_s1 + $0x930] sm:$0xff]  }
 0x116   :  { %v4962_v16 = vpop.f32.mrb[5].mxu0  ;;  %5285 = vmatprep.subr.bf16.mxu1 %v5811_v28 }
 0x117   :  { %v4963_v18 = vadd.f32 %v4962_v16, %v4961_v14  ;;  %v4964_v19 = vpop.f32.mrb[6].mxu0  ;;  %v4983_v21 = vpop.f32.mrb[4].mxu1  ;;  %5264 = vmatpush3.bf16.msra.mxu0 %v5810_v25  ;;  %v5847_v14 = vld [vmem:[%s7271_s1 + $0x9e8] sm:$0xff]   ;;  %v5855_v25 = vld [vmem:[%s7271_s1 + $0x9f8] sm:$0xff]  }
 0x118   :  { %v4965_v24 = vpop.f32.mrb[7].mxu0  ;;  %v4984_v26 = vpop.f32.mrb[5].mxu1  ;;  %5265 = vmatprep.subr.bf16.mxu0 %v5813_v33  ;;  %v5848_v16 = vld [vmem:[%s7271_s1 + $0x9a8] sm:$0xff]   ;;  %v5849_v19 = vld [vmem:[%s7271_s1 + $0x970] sm:$0xff]  }
 0x119   :  { %v3476_v22 = vadd.f32 %v4963_v18, %v6767_v47  ;;  %v4985_v27 = vadd.f32 %v4984_v26, %v4983_v21  ;;  %v4986_v29 = vpop.f32.mrb[6].mxu1  ;;  %5286 = vmatpush3.bf16.msra.mxu1 %v5812_v30  ;;  %v4493_v47 = vcombine.high %v38_v45, %v38_v45  ;;  %v5851_v21 = vld [vmem:[%s7271_s1 + $0x9f0] sm:$0xff]   ;;  %v5854_v24 = vld [vmem:[%s7271_s1 + $0x938] sm:$0xff]   ;;  %v5859_v30 = vld [vmem:[%s7271_s1 + $0xa40] sm:$0xff]  }
 0x11a   :  { %v4987_v31 = vpop.f32.mrb[7].mxu1  ;;  %5287 = vmatprep.subr.bf16.mxu1 %v5815_v35  ;;  %v39_v26 = vld [vmem:[%s7272_s0 + $0x90] sm:$0xff]  ;;  %v5858_v29 = vld [vmem:[%s7271_s1 + $0x9b8] sm:$0xff]   ;;  %v5863_v35 = vld [vmem:[%s7271_s1 + $0xac0] sm:$0xff]  }
 0x11b   :  { %v6869_v32 = vadd.f32 %v4985_v27, %v3476_v22  ;;  %5266 = vmatpush3.bf16.msra.mxu0 %v5814_v34  ;;  %4073 = vmatprep.mubr.bf16.mxu1 %v4493_v47  ;;  %v5852_v22 = vld [vmem:[%s7271_s1 + $0x9b0] sm:$0xff]   ;;  %v4494_v27 = vcombine.low %v39_v26, %v39_v26  ;;  %v4495_v28 = vcombine.high %v39_v26, %v39_v26  ;;  %v40_v31 = vld [vmem:[%s7272_s0 + $0x98] sm:$0xff]  ;;  %v5862_v34 = vld [vmem:[%s7271_s1 + $0xa00] sm:$0xff]  }
 0x11c   :  { %5267 = vmatprep.subr.bf16.mxu0 %v5817_v37  ;;  %v4497_v33 = vcombine.high %v40_v31, %v40_v31  ;;  %v5865_v37 = vld [vmem:[%s7271_s1 + $0xa48] sm:$0xff]   ;;  %v5873_v45 = vld [vmem:[%s7271_s1 + $0xa58] sm:$0xff]  }
 0x11d   :  { %5288 = vmatpush3.bf16.msra.mxu1 %v5816_v36  ;;  %v5864_v36 = vld [vmem:[%s7271_s1 + $0xa80] sm:$0xff]   ;;  %v5875_v47 = vld [vmem:[%s7271_s1 + $0xad8] sm:$0xff]   ;;  %v5904_v26 = vld [vmem:[%s7271_s1 + $0xb88] sm:$0xff]  }
 0x11e   :  { %5289 = vmatprep.subr.bf16.mxu1 %v5819_v39  ;;  %v5867_v39 = vld [vmem:[%s7271_s1 + $0xac8] sm:$0xff]  }
 0x11f   :  { %5268 = vmatpush3.bf16.msra.mxu0 %v5818_v38  ;;  %v5866_v38 = vld [vmem:[%s7271_s1 + $0xa08] sm:$0xff]  }
 0x120   :  { %5297 = vmatprep.subr.bf16.mxu0 %v5823_v44  ;;  %v5872_v44 = vld [vmem:[%s7271_s1 + $0xa90] sm:$0xff]  }
 0x121   :  { %5290 = vmatpush3.bf16.msra.mxu1 %v5822_v43  ;;  %v5871_v43 = vld [vmem:[%s7271_s1 + $0xad0] sm:$0xff]  }
 0x122   :  { %4034 = vmatmul.mubr.bf16.vlgmr.msra.gmra.mrb[32].mxu0 %v4490_v41  ;;  %5319 = vmatprep.subr.bf16.mxu1 %v5827_v49  ;;  %v5869_v41 = vld [vmem:[%s7271_s1 + $0xa50] sm:$0xff]   ;;  %v5877_v49 = vld [vmem:[%s7271_s1 + $0xa60] sm:$0xff]  }
 0x123   :  { %5298 = vmatpush3.bf16.msra.mxu0 %v5826_v48  ;;  %4113 = vmatprep.mubr.bf16.mxu0 %v4495_v28  ;;  %v5876_v48 = vld [vmem:[%s7271_s1 + $0xa98] sm:$0xff]   ;;  %v5906_v28 = vld [vmem:[%s7271_s1 + $0xb10] sm:$0xff]  }
 0x124   :  { %4074 = vmatmul.mubr.bf16.vlgmr.msra.gmra.mrb[32].mxu1 %v4492_v46  ;;  %5299 = vmatprep.subr.bf16.mxu0 %v5829_v51  ;;  %v5874_v46 = vld [vmem:[%s7271_s1 + $0xa18] sm:$0xff]  }
 0x125   :  { %5320 = vmatpush3.bf16.msra.mxu1 %v5828_v50  ;;  %4153 = vmatprep.mubr.bf16.mxu1 %v4497_v33  ;;  %v5878_v50 = vld [vmem:[%s7271_s1 + $0xa20] sm:$0xff]   ;;  %v5911_v33 = vld [vmem:[%s7271_s1 + $0xbd8] sm:$0xff]  }
 0x126   :  { %5321 = vmatprep.subr.bf16.mxu1 %v5831_v53 }
 0x127   :  { %5300 = vmatpush3.bf16.msra.mxu0 %v5830_v52  ;;  %v5879_v52 = vld [vmem:[%s7271_s1 + $0xae0] sm:$0xff]  }
 0x128   :  { %5301 = vmatprep.subr.bf16.mxu0 %v5833_v55 }
 0x129   :  { %5322 = vmatpush3.bf16.msra.mxu1 %v5832_v54  ;;  %v5880_v54 = vld [vmem:[%s7271_s1 + $0xaa0] sm:$0xff]  }
 0x12a   :  { %5323 = vmatprep.subr.bf16.mxu1 %v5835_v57  ;;  %v5881_v57 = vld [vmem:[%s7271_s1 + $0xa68] sm:$0xff]  }
 0x12b   :  { %5302 = vmatpush3.bf16.msra.mxu0 %v5834_v56 }
 0x12c   :  { %5303 = vmatprep.subr.bf16.mxu0 %v5837_v59 }
 0x12d   :  { %5324 = vmatpush3.bf16.msra.mxu1 %v5836_v58 }
 0x12e   :  { %5325 = vmatprep.subr.bf16.mxu1 %v5839_v61 }
 0x12f   :  { %5304 = vmatpush3.bf16.msra.mxu0 %v5838_v60  ;;  %v5882_v60 = vld [vmem:[%s7271_s1 + $0xa28] sm:$0xff]  }
 0x130   :  { %5305 = vmatprep.subr.bf16.mxu0 %v5841_v63  ;;  %v5883_v63 = vld [vmem:[%s7271_s1 + $0xae8] sm:$0xff]  }
 0x131   :  { %5326 = vmatpush3.bf16.msra.mxu1 %v5840_v62 }
 0x132   :  { %5327 = vmatprep.subr.bf16.mxu1 %v5843_v3  ;;  %v5885_v3 = vld [vmem:[%s7271_s1 + $0xa70] sm:$0xff]  }
 0x133   :  { %5306 = vmatpush3.bf16.msra.mxu0 %v5842_v1  ;;  %v5884_v1 = vld [vmem:[%s7271_s1 + $0xaa8] sm:$0xff]  }
 0x134   :  { %5307 = vmatprep.subr.bf16.mxu0 %v5845_v9  ;;  %v5889_v9 = vld [vmem:[%s7271_s1 + $0xa78] sm:$0xff]  }
 0x135   :  { %v5005_v0 = vpop.f32.mrb[8].mxu0  ;;  %5328 = vmatpush3.bf16.msra.mxu1 %v5844_v6  ;;  %v5886_v6 = vld [vmem:[%s7271_s1 + $0xa30] sm:$0xff]  }
 0x136   :  { %v5006_v2 = vpop.f32.mrb[9].mxu0  ;;  %5329 = vmatprep.subr.bf16.mxu1 %v5847_v14 }
 0x137   :  { %v5007_v4 = vadd.f32 %v5006_v2, %v5005_v0  ;;  %v5008_v5 = vpop.f32.mrb[10].mxu0  ;;  %v5027_v7 = vpop.f32.mrb[8].mxu1  ;;  %5308 = vmatpush3.bf16.msra.mxu0 %v5846_v11  ;;  %v5891_v11 = vld [vmem:[%s7271_s1 + $0xaf8] sm:$0xff]  }
 0x138   :  { %v5009_v10 = vpop.f32.mrb[11].mxu0  ;;  %v5028_v12 = vpop.f32.mrb[9].mxu1  ;;  %5309 = vmatprep.subr.bf16.mxu0 %v5849_v19 }
 0x139   :  { %v3556_v8 = vadd.f32 %v5007_v4, %v6869_v32  ;;  %v5029_v13 = vadd.f32 %v5028_v12, %v5027_v7  ;;  %v5030_v15 = vpop.f32.mrb[10].mxu1  ;;  %5330 = vmatpush3.bf16.msra.mxu1 %v5848_v16  ;;  %v4496_v32 = vcombine.low %v40_v31, %v40_v31  ;;  %v5887_v7 = vld [vmem:[%s7271_s1 + $0xaf0] sm:$0xff]   ;;  %v5890_v10 = vld [vmem:[%s7271_s1 + $0xa38] sm:$0xff]   ;;  %v41_v12 = vld [vmem:[%s7272_s0 + $0xa0] sm:$0xff] }
 0x13a   :  { %v5031_v17 = vpop.f32.mrb[11].mxu1  ;;  %5331 = vmatprep.subr.bf16.mxu1 %v5851_v21  ;;  %v4499_v14 = vcombine.high %v41_v12, %v41_v12  ;;  %v5894_v15 = vld [vmem:[%s7271_s1 + $0xab8] sm:$0xff]   ;;  %v5895_v16 = vld [vmem:[%s7271_s1 + $0xb40] sm:$0xff]  }
 0x13b   :  { %v6974_v18 = vadd.f32 %v5029_v13, %v3556_v8  ;;  %5310 = vmatpush3.bf16.msra.mxu0 %v5850_v20  ;;  %v5888_v8 = vld [vmem:[%s7271_s1 + $0xab0] sm:$0xff]   ;;  %v4498_v13 = vcombine.low %v41_v12, %v41_v12  ;;  %v42_v17 = vld [vmem:[%s7272_s0 + $0xa8] sm:$0xff]  ;;  %v5898_v20 = vld [vmem:[%s7271_s1 + $0xb00] sm:$0xff]  }
 0x13c   :  { %5311 = vmatprep.subr.bf16.mxu0 %v5853_v23  ;;  %v4501_v19 = vcombine.high %v42_v17, %v42_v17  ;;  %v5899_v21 = vld [vmem:[%s7271_s1 + $0xbc0] sm:$0xff]   ;;  %v5901_v23 = vld [vmem:[%s7271_s1 + $0xb48] sm:$0xff]   ;;  %v5909_v31 = vld [vmem:[%s7271_s1 + $0xb58] sm:$0xff]  }
 0x13d   :  { %5332 = vmatpush3.bf16.msra.mxu1 %v5852_v22  ;;  %v5900_v22 = vld [vmem:[%s7271_s1 + $0xb80] sm:$0xff]  }
 0x13e   :  { %5333 = vmatprep.subr.bf16.mxu1 %v5855_v25  ;;  %v5903_v25 = vld [vmem:[%s7271_s1 + $0xbc8] sm:$0xff]  }
 0x13f   :  { %5312 = vmatpush3.bf16.msra.mxu0 %v5854_v24  ;;  %v5902_v24 = vld [vmem:[%s7271_s1 + $0xb08] sm:$0xff]  }
 0x140   :  { %5341 = vmatprep.subr.bf16.mxu0 %v5859_v30  ;;  %v5908_v30 = vld [vmem:[%s7271_s1 + $0xb90] sm:$0xff]  }
 0x141   :  { %5334 = vmatpush3.bf16.msra.mxu1 %v5858_v29  ;;  %v5907_v29 = vld [vmem:[%s7271_s1 + $0xbd0] sm:$0xff]  }
 0x142   :  { %4114 = vmatmul.mubr.bf16.vlgmr.msra.gmra.mrb[36].mxu0 %v4494_v27  ;;  %5363 = vmatprep.subr.bf16.mxu1 %v5863_v35  ;;  %v5905_v27 = vld [vmem:[%s7271_s1 + $0xb50] sm:$0xff]   ;;  %v5913_v35 = vld [vmem:[%s7271_s1 + $0xb60] sm:$0xff]  }
 0x143   :  { %5342 = vmatpush3.bf16.msra.mxu0 %v5862_v34  ;;  %4193 = vmatprep.mubr.bf16.mxu0 %v4499_v14  ;;  %v5912_v34 = vld [vmem:[%s7271_s1 + $0xb98] sm:$0xff]  }
 0x144   :  { %4154 = vmatmul.mubr.bf16.vlgmr.msra.gmra.mrb[36].mxu1 %v4496_v32  ;;  %5343 = vmatprep.subr.bf16.mxu0 %v5865_v37  ;;  %v5910_v32 = vld [vmem:[%s7271_s1 + $0xb18] sm:$0xff]   ;;  %v5914_v37 = vld [vmem:[%s7271_s1 + $0xb20] sm:$0xff]  }
 0x145   :  { %5364 = vmatpush3.bf16.msra.mxu1 %v5864_v36  ;;  %4233 = vmatprep.mubr.bf16.mxu1 %v4501_v19 }
 0x146   :  { %5365 = vmatprep.subr.bf16.mxu1 %v5867_v39  ;;  %v5915_v39 = vld [vmem:[%s7271_s1 + $0xbe0] sm:$0xff]  }
 0x147   :  { %5344 = vmatpush3.bf16.msra.mxu0 %v5866_v38 }
 0x148   :  { %5345 = vmatprep.subr.bf16.mxu0 %v5869_v41 }
 0x149   :  { %5366 = vmatpush3.bf16.msra.mxu1 %v5868_v40 }
 0x14a   :  { %5367 = vmatprep.subr.bf16.mxu1 %v5871_v43 }
 0x14b   :  { %5346 = vmatpush3.bf16.msra.mxu0 %v5870_v42  ;;  %v5916_v42 = vld [vmem:[%s7271_s1 + $0xba0] sm:$0xff]  }
 0x14c   :  { %5347 = vmatprep.subr.bf16.mxu0 %v5873_v45  ;;  %v5917_v45 = vld [vmem:[%s7271_s1 + $0xb68] sm:$0xff]  }
 0x14d   :  { %5368 = vmatpush3.bf16.msra.mxu1 %v5872_v44 }
 0x14e   :  { %5369 = vmatprep.subr.bf16.mxu1 %v5875_v47  ;;  %v5918_v47 = vld [vmem:[%s7271_s1 + $0xb28] sm:$0xff]  }
 0x14f   :  { %5348 = vmatpush3.bf16.msra.mxu0 %v5874_v46 }
 0x150   :  { %5349 = vmatprep.subr.bf16.mxu0 %v5877_v49 }
 0x151   :  { %5370 = vmatpush3.bf16.msra.mxu1 %v5876_v48 }
 0x152   :  { %5371 = vmatprep.subr.bf16.mxu1 %v5879_v52  ;;  %v5920_v52 = vld [vmem:[%s7271_s1 + $0xba8] sm:$0xff]  }
 0x153   :  { %5350 = vmatpush3.bf16.msra.mxu0 %v5878_v50  ;;  %v5919_v50 = vld [vmem:[%s7271_s1 + $0xbe8] sm:$0xff]  }
 0x154   :  { %5351 = vmatprep.subr.bf16.mxu0 %v5881_v57  ;;  %v5923_v57 = vld [vmem:[%s7271_s1 + $0xbf0] sm:$0xff]  }
 0x155   :  { %v5049_v51 = vpop.f32.mrb[12].mxu0  ;;  %5372 = vmatpush3.bf16.msra.mxu1 %v5880_v54 }
 0x156   :  { %v5050_v53 = vpop.f32.mrb[13].mxu0  ;;  %5373 = vmatprep.subr.bf16.mxu1 %v5883_v63 }
 0x157   :  { %v5051_v55 = vadd.f32 %v5050_v53, %v5049_v51  ;;  %v5052_v56 = vpop.f32.mrb[14].mxu0  ;;  %v5071_v58 = vpop.f32.mrb[12].mxu1  ;;  %5352 = vmatpush3.bf16.msra.mxu0 %v5882_v60  ;;  %v5926_v60 = vld [vmem:[%s7271_s1 + $0xb38] sm:$0xff]  }
 0x158   :  { %v5053_v61 = vpop.f32.mrb[15].mxu0  ;;  %v5072_v62 = vpop.f32.mrb[13].mxu1  ;;  %5353 = vmatprep.subr.bf16.mxu0 %v5885_v3  ;;  %v5922_v56 = vld [vmem:[%s7271_s1 + $0xb30] sm:$0xff]   ;;  %v44_v3 = vld [vmem:[%s7272_s0 + $0xb8] sm:$0xff] }
 0x159   :  { %v3636_v59 = vadd.f32 %v5051_v55, %v6974_v18  ;;  %v5073_v0 = vadd.f32 %v5072_v62, %v5071_v58  ;;  %v5074_v2 = vpop.f32.mrb[14].mxu1  ;;  %5374 = vmatpush3.bf16.msra.mxu1 %v5884_v1  ;;  %v4500_v18 = vcombine.low %v42_v17, %v42_v17  ;;  %v5921_v55 = vld [vmem:[%s7271_s1 + $0xb70] sm:$0xff]   ;;  %v5927_v61 = vld [vmem:[%s7271_s1 + $0xbf8] sm:$0xff]  }
 0x15a   :  { %v5075_v4 = vpop.f32.mrb[15].mxu1  ;;  %5375 = vmatprep.subr.bf16.mxu1 %v5887_v7  ;;  %v5924_v58 = vld [vmem:[%s7271_s1 + $0xbb0] sm:$0xff]   ;;  %v5930_v1 = vld [vmem:[%s7271_s1 + $0xbb8] sm:$0xff]   ;;  %v5942_v2 = vmov 0.0   ;;  %v5934_v7 = vld [vmem:[%s7271_s1 + $0xc08] sm:$0xff]  }
 0x15b   :  { %v7082_v5 = vadd.f32 %v5073_v0, %v3636_v59  ;;  %5354 = vmatpush3.bf16.msra.mxu0 %v5886_v6  ;;  %v5925_v59 = vld [vmem:[%s7271_s1 + $0xb78] sm:$0xff]   ;;  %v43_v62 = vld [vmem:[%s7272_s0 + $0xb0] sm:$0xff]  ;;  %v4504_v4 = vcombine.low %v44_v3, %v44_v3  ;;  %v5933_v6 = vld [vmem:[%s7271_s1 + $0xc00] sm:$0xff]  }
 0x15c   :  { %5355 = vmatprep.subr.bf16.mxu0 %v5889_v9  ;;  %v4502_v63 = vcombine.low %v43_v62, %v43_v62  ;;  %v4503_v0 = vcombine.high %v43_v62, %v43_v62  ;;  %v5936_v9 = vld [vmem:[%s7271_s1 + $0xc18] sm:$0xff]  }
 0x15d   :  { %5376 = vmatpush3.bf16.msra.mxu1 %v5888_v8  ;;  %v5935_v8 = vld [vmem:[%s7271_s1 + $0xc10] sm:$0xff]  }
 0x15e   :  { %5377 = vmatprep.subr.bf16.mxu1 %v5891_v11 }
 0x15f   :  { %5356 = vmatpush3.bf16.msra.mxu0 %v5890_v10  ;;  %v5937_v10 = vld [vmem:[%s7271_s1 + $0xc20] sm:$0xff]  }
 0x160   :  { %5385 = vmatprep.subr.bf16.mxu0 %v5895_v16  ;;  %v5938_v16 = vld [vmem:[%s7271_s1 + $0xc28] sm:$0xff]  }
 0x161   :  { %5378 = vmatpush3.bf16.msra.mxu1 %v5894_v15 }
 0x162   :  { %4194 = vmatmul.mubr.bf16.vlgmr.msra.gmra.mrb[40].mxu0 %v4498_v13  ;;  %5407 = vmatprep.subr.bf16.mxu1 %v5899_v21 }
 0x163   :  { %5386 = vmatpush3.bf16.msra.mxu0 %v5898_v20  ;;  %4273 = vmatprep.mubr.bf16.mxu0 %v4503_v0  ;;  %v4369_v0 = vld [vmem:[%s7274_s3 + $0x38] sm:$0xff] }
 0x164   :  { %4234 = vmatmul.mubr.bf16.vlgmr.msra.gmra.mrb[40].mxu1 %v4500_v18  ;;  %5387 = vmatprep.subr.bf16.mxu0 %v5901_v23 }
 0x165   :  { %5408 = vmatpush3.bf16.msra.mxu1 %v5900_v22 }
 0x166   :  { %5409 = vmatprep.subr.bf16.mxu1 %v5903_v25  ;;  %v5940_v25 = vld [vmem:[%s7271_s1 + $0xc38] sm:$0xff]  }
 0x167   :  { %5388 = vmatpush3.bf16.msra.mxu0 %v5902_v24  ;;  %v5939_v24 = vld [vmem:[%s7271_s1 + $0xc30] sm:$0xff]  }
 0x168   :  { %5389 = vmatprep.subr.bf16.mxu0 %v5905_v27 }
 0x169   :  { %5410 = vmatpush3.bf16.msra.mxu1 %v5904_v26  ;;  %v5941_v26 = vld [vmem:[%s7272_s0 + $0xc0] ss:$0 sps:$4 sm:$0xff]  }
 0x16a   :  { %5411 = vmatprep.subr.bf16.mxu1 %v5907_v29 }
 0x16b   :  { %5390 = vmatpush3.bf16.msra.mxu0 %v5906_v28 }
 0x16c   :  { %5391 = vmatprep.subr.bf16.mxu0 %v5909_v31 }
 0x16d   :  { %5412 = vmatpush3.bf16.msra.mxu1 %v5908_v30 }
 0x16e   :  { %5413 = vmatprep.subr.bf16.mxu1 %v5911_v33 }
 0x16f   :  { %5392 = vmatpush3.bf16.msra.mxu0 %v5910_v32 }
 0x170   :  { %5393 = vmatprep.subr.bf16.mxu0 %v5913_v35 }
 0x171   :  { %5414 = vmatpush3.bf16.msra.mxu1 %v5912_v34 }
 0x172   :  { %5415 = vmatprep.subr.bf16.mxu1 %v5915_v39 }
 0x173   :  { %5394 = vmatpush3.bf16.msra.mxu0 %v5914_v37 }
 0x174   :  { %5395 = vmatprep.subr.bf16.mxu0 %v5917_v45 }
 0x175   :  { %v5093_v36 = vpop.f32.mrb[16].mxu0  ;;  %5416 = vmatpush3.bf16.msra.mxu1 %v5916_v42 }
 0x176   :  { %v5094_v38 = vpop.f32.mrb[17].mxu0  ;;  %5417 = vmatprep.subr.bf16.mxu1 %v5919_v50 }
 0x177   :  { %v5095_v40 = vadd.f32 %v5094_v38, %v5093_v36  ;;  %v5096_v41 = vpop.f32.mrb[18].mxu0  ;;  %v5115_v43 = vpop.f32.mrb[16].mxu1  ;;  %5396 = vmatpush3.bf16.msra.mxu0 %v5918_v47 }
 0x178   :  { %v5097_v46 = vpop.f32.mrb[19].mxu0  ;;  %v5116_v48 = vpop.f32.mrb[17].mxu1  ;;  %5397 = vmatprep.subr.bf16.mxu0 %v5921_v55 }
 0x179   :  { %v3716_v44 = vadd.f32 %v5095_v40, %v7082_v5  ;;  %v5117_v49 = vadd.f32 %v5116_v48, %v5115_v43  ;;  %v5118_v51 = vpop.f32.mrb[18].mxu1  ;;  %5418 = vmatpush3.bf16.msra.mxu1 %v5920_v52  ;;  %v4505_v5 = vcombine.high %v44_v3, %v44_v3  ;;  %v4362_v52 = vld [vmem:[%s7274_s3] sm:$0xff] }
 0x17a   :  { %v5119_v53 = vpop.f32.mrb[19].mxu1  ;;  %5419 = vmatprep.subr.bf16.mxu1 %v5923_v57  ;;  %v5944_v51 = vmov 0.0|0.0  }
 0x17b   :  { %v3756_v54 = vadd.f32 %v5117_v49, %v3716_v44  ;;  %5398 = vmatpush3.bf16.msra.mxu0 %v5922_v56  ;;  %4313 = vmatprep.mubr.bf16.mxu1 %v4505_v5  ;;  %v4363_v53 = vld [vmem:[%s7274_s3 + $0x8] sm:$0xff]  ;;  %v4365_v56 = vld [vmem:[%s7274_s3 + $0x18] sm:$0xff] }
 0x17c   :  { %5399 = vmatprep.subr.bf16.mxu0 %v5925_v59  ;;  %v5487_v55 = vpack.c.bf16 %v4363_v53, %v4362_v52  ;;  %v4367_v59 = vld [vmem:[%s7274_s3 + $0x28] sm:$0xff] }
 0x17d   :  { %5420 = vmatpush3.bf16.msra.mxu1 %v5924_v58  ;;  %v4366_v58 = vld [vmem:[%s7274_s3 + $0x20] sm:$0xff] }
 0x17e   :  { %5421 = vmatprep.subr.bf16.mxu1 %v5927_v61 }
 0x17f   :  { %5400 = vmatpush3.bf16.msra.mxu0 %v5926_v60  ;;  %v5493_v60 = vpack.c.bf16 %v4367_v59, %v4366_v58 }
 0x180   :  { %5447 = vmatprep.subr.bf16.mxu0 %v5942_v2 }
 0x181   :  { %5422 = vmatpush3.bf16.msra.mxu1 %v5930_v1 }
 0x182   :  { %4274 = vmatmul.mubr.bf16.vlgmr.msra.gmra.mrb[44].mxu0 %v4502_v63  ;;  %5486 = vmatprep.subr.bf16.mxu1 %v5944_v51  ;;  %v4368_v63 = vld [vmem:[%s7274_s3 + $0x30] sm:$0xff] }
 0x183   :  { %5448 = vmatpush3.bf16.msra.mxu0 %v5933_v6  ;;  %5463 = vmatprep.mubr.msk.bf16.mxu0 %vm5943_vm0, %v5942_v2  ;;  %v5496_v3 = vpack.c.bf16 %v4369_v0, %v4368_v63 }
 0x184   :  { %4314 = vmatmul.mubr.bf16.vlgmr.msra.gmra.mrb[44].mxu1 %v4504_v4  ;;  %5449 = vmatprep.subr.bf16.mxu0 %v5942_v2 }
 0x185   :  { %5483 = vmatprep.mubr.msk.f32.mxu1 %vm5943_vm0, %v5942_v2  ;;  %5488 = vmatpush3.bf16.msra.mxu1 %v5487_v55 }
 0x186   :  { %5489 = vmatprep.subr.bf16.mxu1 %v5944_v51 }
 0x187   :  { %5450 = vmatpush3.bf16.msra.mxu0 %v5934_v7 }
 0x188   :  { %5451 = vmatprep.subr.bf16.mxu0 %v5942_v2 }
 0x18b   :  { %5452 = vmatpush3.bf16.msra.mxu0 %v5935_v8 }
 0x18c   :  { %5453 = vmatprep.subr.bf16.mxu0 %v5942_v2 }
 0x18f   :  { %5454 = vmatpush3.bf16.msra.mxu0 %v5936_v9 }
 0x190   :  { %5455 = vmatprep.subr.bf16.mxu0 %v5942_v2 }
 0x193   :  { %5456 = vmatpush3.bf16.msra.mxu0 %v5937_v10 }
 0x194   :  { %5457 = vmatprep.subr.bf16.mxu0 %v5942_v2 }
 0x195   :  { %v5137_v11 = vpop.f32.mrb[20].mxu0 }
 0x196   :  { %v5138_v12 = vpop.f32.mrb[21].mxu0 }
 0x197   :  { %v5139_v13 = vadd.f32 %v5138_v12, %v5137_v11  ;;  %v5140_v14 = vpop.f32.mrb[22].mxu0  ;;  %v5159_v15 = vpop.f32.mrb[20].mxu1  ;;  %5458 = vmatpush3.bf16.msra.mxu0 %v5938_v16 }
 0x198   :  { %v5141_v17 = vpop.f32.mrb[23].mxu0  ;;  %v5160_v18 = vpop.f32.mrb[21].mxu1  ;;  %5459 = vmatprep.subr.bf16.mxu0 %v5942_v2 }
 0x199   :  { %v3796_v19 = vadd.f32 %v5139_v13, %v3756_v54  ;;  %v5161_v20 = vadd.f32 %v5160_v18, %v5159_v15  ;;  %v5162_v21 = vpop.f32.mrb[22].mxu1  ;;  %v4364_v54 = vld [vmem:[%s7274_s3 + $0x10] sm:$0xff] }
 0x19a   :  { %v5163_v22 = vpop.f32.mrb[23].mxu1  ;;  %v5490_v57 = vpack.c.bf16 %v4365_v56, %v4364_v54  ;;  %v4899_v54 = vld [vmem:[%s7275_s4] ss:$0 sm:$0xff] }
 0x19b   :  { %v3836_v23 = vadd.f32 %v5161_v20, %v3796_v19  ;;  %5460 = vmatpush3.bf16.msra.mxu0 %v5939_v24 }
 0x19c   :  { %5461 = vmatprep.subr.bf16.mxu0 %v5942_v2  ;;  %5491 = vmatpush3.bf16.msra.mxu1 %v5490_v57 }
 0x19d   :  { %5492 = vmatprep.subr.bf16.mxu1 %v5944_v51 }
 0x19f   :  { %5462 = vmatpush3.bf16.msra.mxu0 %v5940_v25 }
 0x1a0   :  { %5494 = vmatpush3.bf16.msra.mxu1 %v5493_v60 }
 0x1a1   :  { %5495 = vmatprep.subr.bf16.mxu1 %v5944_v51 }
 0x1a2   :  { %5464 = vmatmul.mubr.bf16.vlgmr.msra.gmra.mrb[48].mxu0 %v5941_v26 }
 0x1a4   :  { %5497 = vmatpush3.bf16.msra.mxu1 %v5496_v3 }
 0x1b5   :  { %v5181_v27 = vpop.f32.mrb[24].mxu0 }
 0x1b6   :  { %v5182_v28 = vpop.f32.mrb[25].mxu0 }
 0x1b7   :  { %v5183_v29 = vadd.f32 %v5182_v28, %v5181_v27  ;;  %v5184_v30 = vpop.f32.mrb[26].mxu0  ;;  %v5203_v31 = vpop.f32.mrb[24].mxu1 }
 0x1b8   :  { %v5185_v32 = vpop.f32.mrb[27].mxu0  ;;  %v5204_v33 = vpop.f32.mrb[25].mxu1 }
 0x1b9   :  { %v3876_v34 = vadd.f32 %v5183_v29, %v3836_v23  ;;  %v5205_v35 = vadd.f32 %v5204_v33, %v5203_v31  ;;  %v5206_v36 = vpop.f32.mrb[26].mxu1 }
 0x1ba   :  { %v5207_v37 = vpop.f32.mrb[27].mxu1 }
 0x1bb   :  { %v3916_v38 = vadd.f32 %v5205_v35, %v3876_v34 }
 0x1d5   :  { %v5225_v39 = vpop.f32.mrb[28].mxu0 }
 0x1d6   :  { %v5226_v40 = vpop.f32.mrb[29].mxu0 }
 0x1d7   :  { %v5227_v41 = vadd.f32 %v5226_v40, %v5225_v39  ;;  %v5228_v42 = vpop.f32.mrb[30].mxu0  ;;  %v5247_v43 = vpop.f32.mrb[28].mxu1 }
 0x1d8   :  { %v5229_v44 = vpop.f32.mrb[31].mxu0  ;;  %v5248_v45 = vpop.f32.mrb[29].mxu1 }
 0x1d9   :  { %v3956_v46 = vadd.f32 %v5227_v41, %v3916_v38  ;;  %v5249_v47 = vadd.f32 %v5248_v45, %v5247_v43  ;;  %v5250_v48 = vpop.f32.mrb[30].mxu1 }
 0x1da   :  { %v5251_v49 = vpop.f32.mrb[31].mxu1 }
 0x1db   :  { %v3996_v50 = vadd.f32 %v5249_v47, %v3956_v46 }
 0x1f5   :  { %v5269_v61 = vpop.f32.mrb[32].mxu0 }
 0x1f6   :  { %v5270_v62 = vpop.f32.mrb[33].mxu0 }
 0x1f7   :  { %v5271_v1 = vadd.f32 %v5270_v62, %v5269_v61  ;;  %v5272_v2 = vpop.f32.mrb[34].mxu0  ;;  %v5291_v4 = vpop.f32.mrb[32].mxu1 }
 0x1f8   :  { %v5273_v5 = vpop.f32.mrb[35].mxu0  ;;  %v5292_v7 = vpop.f32.mrb[33].mxu1 }
 0x1f9   :  { %v4036_v6 = vadd.f32 %v5271_v1, %v3996_v50  ;;  %v5293_v8 = vadd.f32 %v5292_v7, %v5291_v4  ;;  %v5294_v9 = vpop.f32.mrb[34].mxu1 }
 0x1fa   :  { %v5295_v10 = vpop.f32.mrb[35].mxu1 }
 0x1fb   :  { %v4076_v11 = vadd.f32 %v5293_v8, %v4036_v6 }
 0x215   :  { %v5313_v12 = vpop.f32.mrb[36].mxu0 }
 0x216   :  { %v5314_v13 = vpop.f32.mrb[37].mxu0 }
 0x217   :  { %v5315_v14 = vadd.f32 %v5314_v13, %v5313_v12  ;;  %v5316_v15 = vpop.f32.mrb[38].mxu0  ;;  %v5335_v16 = vpop.f32.mrb[36].mxu1 }
 0x218   :  { %v5317_v17 = vpop.f32.mrb[39].mxu0  ;;  %v5336_v18 = vpop.f32.mrb[37].mxu1 }
 0x219   :  { %v4116_v19 = vadd.f32 %v5315_v14, %v4076_v11  ;;  %v5337_v20 = vadd.f32 %v5336_v18, %v5335_v16  ;;  %v5338_v21 = vpop.f32.mrb[38].mxu1 }
 0x21a   :  { %v5339_v22 = vpop.f32.mrb[39].mxu1 }
 0x21b   :  { %v4156_v23 = vadd.f32 %v5337_v20, %v4116_v19 }
 0x235   :  { %v5357_v24 = vpop.f32.mrb[40].mxu0 }
 0x236   :  { %v5358_v25 = vpop.f32.mrb[41].mxu0 }
 0x237   :  { %v5359_v26 = vadd.f32 %v5358_v25, %v5357_v24  ;;  %v5360_v27 = vpop.f32.mrb[42].mxu0  ;;  %v5379_v28 = vpop.f32.mrb[40].mxu1 }
 0x238   :  { %v5361_v29 = vpop.f32.mrb[43].mxu0  ;;  %v5380_v30 = vpop.f32.mrb[41].mxu1 }
 0x239   :  { %v4196_v31 = vadd.f32 %v5359_v26, %v4156_v23  ;;  %v5381_v32 = vadd.f32 %v5380_v30, %v5379_v28  ;;  %v5382_v33 = vpop.f32.mrb[42].mxu1 }
 0x23a   :  { %v5383_v34 = vpop.f32.mrb[43].mxu1 }
 0x23b   :  { %v4236_v35 = vadd.f32 %v5381_v32, %v4196_v31 }
 0x255   :  { %v5401_v36 = vpop.f32.mrb[44].mxu0 }
 0x256   :  { %v5402_v37 = vpop.f32.mrb[45].mxu0 }
 0x257   :  { %v5403_v38 = vadd.f32 %v5402_v37, %v5401_v36  ;;  %v5404_v39 = vpop.f32.mrb[46].mxu0  ;;  %v5423_v40 = vpop.f32.mrb[44].mxu1 }
 0x258   :  { %v5405_v41 = vpop.f32.mrb[47].mxu0  ;;  %v5424_v42 = vpop.f32.mrb[45].mxu1 }
 0x259   :  { %v4276_v43 = vadd.f32 %v5403_v38, %v4236_v35  ;;  %v5425_v44 = vadd.f32 %v5424_v42, %v5423_v40  ;;  %v5426_v45 = vpop.f32.mrb[46].mxu1 }
 0x25a   :  { %v5427_v46 = vpop.f32.mrb[47].mxu1 }
 0x25b   :  { %v4316_v47 = vadd.f32 %v5425_v44, %v4276_v43 }
 0x275   :  { %v4355_v48 = vpop.f32.mrb[48].mxu0 }
 0x276   :  { %v4356_v49 = vadd.f32 %v4355_v48, %v4316_v47  ;;  %v5465_v50 = vpop.f32.mrb[49].mxu0 }
 0x277   :  { %v4358_v51 = vpop.f32.mrb[50].mxu0 }
 0x278   :  { %v4361_v52 = vmax.f32 %v4356_v49, 0.0  ;;  %v5466_v53 = vpop.f32.mrb[51].mxu0 }
 0x27a   :  { %5484 = vmatmul.mubr.msk.f32.vlgmr.msra.gmra.mrb[48].mxu1 %vm4377_vm1, %v4361_v52 }
 0x34d   :  { %v4447_v55 = vpop.f32.mrb[48].mxu1 }
 0x34e   :  { %v4448_v56 = vadd.f32 %v4899_v54, %v4447_v55  ;;  %v5485_v57 = vpop.f32.mrb[49].mxu1 }
 0x350   :  { %4452 = vst.msk [vmem:[%s7276_s5] sm:$0xff] %vm4451_vm2, %v4448_v56 }

</bundles_post_ra>
